<compile_context>
chip_gen: v7x
topology: tpu7x:2x2x1
jax: 0.10.0
libtpu: 0.0.40
codegen_flags: <defaults>
</compile_context>

<pallas_src>
import functools
import math

import jax
import jax.numpy as jnp
from jax.experimental import pallas as pl
from jax.experimental.pallas import tpu as pltpu

# ----------------------------- config (small synthetic CLIP text tower) ------
N_BATCH = 2       # number of prompts
SEQ_LEN = 8       # context length
WIDTH = 32        # transformer width (D)
NUM_HEADS = 4     # attention heads
NUM_LAYERS = 2    # transformer layers
MLP_DIM = 4 * WIDTH
EMBED_DIM = 16    # text_projection output dim
LN_EPS = 1e-5


# ----------------------------- kernel -----------------------------------------
def text_encoder_kernel(eot_ref,                       # scalar prefetch, SMEM (N,)
                        prompts_ref, pos_ref,          # (L,D), (L,D)
                        ln1_w_ref, ln1_b_ref,          # (1,D)
                        q_w_ref, k_w_ref, v_w_ref,     # (D,D) bf16
                        q_b_ref, k_b_ref, v_b_ref,     # (1,D)
                        projh_w_ref, proj_b_ref,       # (H,Hd,D) bf16, (1,D)
                        ln2_w_ref, ln2_b_ref,          # (1,D)
                        fc1_w_ref, fc1_b_ref,          # (D,M) bf16, (1,M)
                        fc2_w_ref, fc2_b_ref,          # (M,D) bf16, (1,D)
                        lnf_w_ref, lnf_b_ref,          # (1,D)
                        tproj_ref,                     # (D,E) bf16
                        x_out_ref, k_out_ref,          # (L,D), (1,E)
                        x2_ref,                        # VMEM scratch (L,D) f32
                        *, num_heads):
  f32 = jnp.float32
  b = pl.program_id(0)                      # prompt index  (parallel)
  l = pl.program_id(1)                      # layer index   (arbitrary, streams weights)
  n_layers = pl.num_programs(1)
  L, D = x2_ref.shape
  H = num_heads
  Hd = D // H
  scale = 1.0 / math.sqrt(Hd)

  # ---- layer 0: initialize residual stream with prompts + positional embedding ----
  @pl.when(l == 0)
  def _init():
    x2_ref[...] = prompts_ref[...].astype(f32) + pos_ref[...].astype(f32)

  x2 = x2_ref[...]                          # (L, D) f32 residual stream

  # CLIP causal mask (upper triangle = -inf)
  rows = jax.lax.broadcasted_iota(jnp.int32, (L, L), 0)
  cols = jax.lax.broadcasted_iota(jnp.int32, (L, L), 1)
  causal = jnp.where(cols > rows, jnp.float32(-1e30), jnp.float32(0.0))

  def layer_norm(x, w_ref, b_ref):
    mu = jnp.mean(x, axis=-1, keepdims=True)
    var = jnp.mean((x - mu) ** 2, axis=-1, keepdims=True)
    return ((x - mu) * jax.lax.rsqrt(var + LN_EPS)
            * w_ref[...].astype(f32) + b_ref[...].astype(f32))

  def linear(x, w_ref, b_ref):
    # bf16-stored weights upcast; accumulation stays f32.
    return (jnp.dot(x, w_ref[...].astype(f32), preferred_element_type=f32)
            + b_ref[...].astype(f32))

  # ---- attention sub-block: x = x + out_proj(MHA(ln_1(x), causal)) ----
  h_ln = layer_norm(x2, ln1_w_ref, ln1_b_ref)
  q = linear(h_ln, q_w_ref, q_b_ref) * scale          # scale folded into q
  k = linear(h_ln, k_w_ref, k_b_ref)
  v = linear(h_ln, v_w_ref, v_b_ref)

  def split_heads(t):                                  # (L, D) -> (H, L, Hd)
    return jnp.stack([t[:, hh * Hd:(hh + 1) * Hd] for hh in range(H)], axis=0)

  qh, kh, vh = split_heads(q), split_heads(k), split_heads(v)

  # One batched einsum for all heads (QK^T), one for PV.
  s = jnp.einsum("hqd,hkd->hqk", qh, kh, preferred_element_type=f32) + causal[None]
  s = s - jnp.max(s, axis=-1, keepdims=True)
  p = jnp.exp(s)
  # approx reciprocal (EUP slot); swap for exact division if bit parity is needed.
  p = p * pl.reciprocal(jnp.sum(p, axis=-1, keepdims=True), approx=True)
  o = jnp.einsum("hqk,hkd->hqd", p, vh, preferred_element_type=f32)    # (H, L, Hd)

  # out_proj(concat_h o_h) == sum_h o_h @ Wp[h*Hd:(h+1)*Hd, :]  (one batched einsum)
  attn = jnp.sum(
      jnp.einsum("hld,hdo->hlo", o, projh_w_ref[...].astype(f32),
                 preferred_element_type=f32),
      axis=0)                                                          # (L, D)
  x2 = x2 + attn + proj_b_ref[...].astype(f32)

  # ---- MLP sub-block: x = x + fc2(QuickGELU(fc1(ln_2(x)))) ----
  h2 = layer_norm(x2, ln2_w_ref, ln2_b_ref)
  m = linear(h2, fc1_w_ref, fc1_b_ref)
  m = m * jax.nn.sigmoid(1.702 * m)                    # QuickGELU (CLIP)
  x2 = x2 + linear(m, fc2_w_ref, fc2_b_ref)

  x2_ref[...] = x2

  # ---- last layer: ln_final + EOT gather (from registers) + text_projection ----
  @pl.when(l == n_layers - 1)
  def _finalize():
    xn = layer_norm(x2, lnf_w_ref, lnf_b_ref)          # (L, D) f32
    x_out_ref[...] = xn.astype(x_out_ref.dtype)
    sel = jax.lax.broadcasted_iota(jnp.int32, (L, 1), 0) == eot_ref[b]
    pooled = jnp.sum(jnp.where(sel, xn, 0.0), axis=0, keepdims=True)   # (1, D)
    k_out_ref[...] = jnp.dot(pooled, tproj_ref[...].astype(f32),
                             preferred_element_type=f32).astype(k_out_ref.dtype)


# ----------------------------- wrapper ----------------------------------------
def text_encoder_forward(params, prompts, tokenized_prompts):
  N, L, D = prompts.shape
  H = NUM_HEADS
  Hd = D // H
  M = params["fc1_w"].shape[-1]
  E = params["text_proj"].shape[-1]
  Ly = params["q_w"].shape[0]

  # glue: trivial argmax to find the EOT position; fed via scalar prefetch (SMEM).
  eot = jnp.argmax(tokenized_prompts, axis=-1).astype(jnp.int32)

  # host-side (free) reshape: expose heads on the out-projection weight so the kernel
  # can do one batched einsum instead of H sequentially accumulated dots.
  projh_w = params["proj_w"].reshape(Ly, H, Hd, D)

  def stacked(*tail):                       # per-layer weight stack, streamed over l
    zeros = (0,) * len(tail)
    return pl.BlockSpec((None,) + tail, lambda b, l, e: (l,) + zeros)

  def const(*shape):                        # fetched once, resident across the grid
    zeros = (0,) * len(shape)
    return pl.BlockSpec(shape, lambda b, l, e: zeros)

  in_specs = [
      pl.BlockSpec((None, L, D), lambda b, l, e: (b, 0, 0)),   # prompts
      const(L, D),                                             # positional_embedding
      stacked(1, D), stacked(1, D),                            # ln_1 w/b
      stacked(D, D), stacked(D, D), stacked(D, D),             # q/k/v weights (bf16)
      stacked(1, D), stacked(1, D), stacked(1, D),             # q/k/v biases
      stacked(H, Hd, D), stacked(1, D),                        # out_proj w (bf16) / b
      stacked(1, D), stacked(1, D),                            # ln_2 w/b
      stacked(D, M), stacked(1, M),                            # fc1 w (bf16) / b
      stacked(M, D), stacked(1, D),                            # fc2 w (bf16) / b
      const(1, D), const(1, D),                                # ln_final w/b
      const(D, E),                                             # text_projection (bf16)
  ]
  out_specs = (
      pl.BlockSpec((None, L, D), lambda b, l, e: (b, 0, 0)),   # x      (per prompt)
      pl.BlockSpec((None, 1, E), lambda b, l, e: (b, 0, 0)),   # k_x    (per prompt)
  )

  grid_spec = pltpu.PrefetchScalarGridSpec(
      num_scalar_prefetch=1,
      grid=(N, Ly),                         # (prompt: parallel, layer: arbitrary)
      in_specs=in_specs,
      out_specs=out_specs,
      scratch_shapes=[pltpu.VMEM((L, D), jnp.float32)],        # resident residual stream
  )

  kernel = functools.partial(text_encoder_kernel, num_heads=H)
  x_out, k_x = pl.pallas_call(
      kernel,
      out_shape=(jax.ShapeDtypeStruct((N, L, D), jnp.float32),
                 jax.ShapeDtypeStruct((N, 1, E), jnp.float32)),
      grid_spec=grid_spec,
      compiler_params=pltpu.CompilerParams(
          dimension_semantics=("parallel", "arbitrary"),
          vmem_limit_bytes=32 * 1024 * 1024),   # ~2 streamed bf16 layers + residual
  )(eot, prompts, params["pos_emb"],
    params["ln1_w"], params["ln1_b"],
    params["q_w"], params["k_w"], params["v_w"],
    params["q_b"], params["k_b"], params["v_b"],
    projh_w, params["proj_b"],
    params["ln2_w"], params["ln2_b"],
    params["fc1_w"], params["fc1_b"],
    params["fc2_w"], params["fc2_b"],
    params["lnf_w"], params["lnf_b"], params["text_proj"])
  return x_out, k_x.reshape(N, E)


# ----------------------------- pure-JAX reference (same bf16 weights) ---------
def text_encoder_reference(params, prompts, tokenized_prompts):
  N, L, D = prompts.shape
  H, Hd = NUM_HEADS, D // NUM_HEADS
  W = lambda a: a.astype(jnp.float32)
  x = prompts + params["pos_emb"][None]

  def ln(v, w, b):
    mu = jnp.mean(v, -1, keepdims=True)
    var = jnp.mean((v - mu) ** 2, -1, keepdims=True)
    return (v - mu) * jax.lax.rsqrt(var + LN_EPS) * w + b

  mask = jnp.where(jnp.arange(L)[None, :] > jnp.arange(L)[:, None], -1e30, 0.0)
  for i in range(NUM_LAYERS):
    h = ln(x, params["ln1_w"][i, 0], params["ln1_b"][i, 0])
    q = h @ W(params["q_w"][i]) + params["q_b"][i, 0]
    k = h @ W(params["k_w"][i]) + params["k_b"][i, 0]
    v = h @ W(params["v_w"][i]) + params["v_b"][i, 0]
    q = q.reshape(N, L, H, Hd).transpose(0, 2, 1, 3)
    k = k.reshape(N, L, H, Hd).transpose(0, 2, 1, 3)
    v = v.reshape(N, L, H, Hd).transpose(0, 2, 1, 3)
    s = jnp.einsum("bhqd,bhkd->bhqk", q, k) / math.sqrt(Hd) + mask
    p = jax.nn.softmax(s, axis=-1)
    a = jnp.einsum("bhqk,bhkd->bhqd", p, v).transpose(0, 2, 1, 3).reshape(N, L, D)
    x = x + (a @ W(params["proj_w"][i]) + params["proj_b"][i, 0])
    h2 = ln(x, params["ln2_w"][i, 0], params["ln2_b"][i, 0])
    m = h2 @ W(params["fc1_w"][i]) + params["fc1_b"][i, 0]
    m = m * jax.nn.sigmoid(1.702 * m)
    x = x + (m @ W(params["fc2_w"][i]) + params["fc2_b"][i, 0])

  x = ln(x, params["lnf_w"][0], params["lnf_b"][0])
  eot = jnp.argmax(tokenized_prompts, axis=-1)
  k_x = x[jnp.arange(N), eot] @ W(params["text_proj"])
  return x, k_x


# ----------------------------- deterministic parameter init -------------------
def init_params(key):
  ks = jax.random.split(key, 18)
  Ly = NUM_LAYERS
  bf16 = jnp.bfloat16
  f32 = jnp.float32

  def nrm(k, shape, s):
    return s * jax.random.normal(k, shape, f32)

  return {
      "pos_emb": nrm(ks[0], (SEQ_LEN, WIDTH), 0.01),
      "lnf_w": jnp.ones((1, WIDTH), f32) + nrm(ks[1], (1, WIDTH), 0.01),
      "lnf_b": nrm(ks[2], (1, WIDTH), 0.01),
      "text_proj": nrm(ks[3], (WIDTH, EMBED_DIM), 0.02).astype(bf16),
      # per-layer stacks (leading layer axis); matmul weights stored in bf16
      "ln1_w": jnp.ones((Ly, 1, WIDTH), f32) + nrm(ks[4], (Ly, 1, WIDTH), 0.01),
      "ln1_b": nrm(ks[5], (Ly, 1, WIDTH), 0.01),
      "q_w": nrm(ks[6], (Ly, WIDTH, WIDTH), 0.02).astype(bf16),
      "k_w": nrm(ks[7], (Ly, WIDTH, WIDTH), 0.02).astype(bf16),
      "v_w": nrm(ks[8], (Ly, WIDTH, WIDTH), 0.02).astype(bf16),
      "q_b": nrm(ks[9], (Ly, 1, WIDTH), 0.01),
      "k_b": nrm(ks[10], (Ly, 1, WIDTH), 0.01),
      "v_b": nrm(ks[11], (Ly, 1, WIDTH), 0.01),
      "proj_w": nrm(ks[12], (Ly, WIDTH, WIDTH), 0.02).astype(bf16),
      "proj_b": nrm(ks[13], (Ly, 1, WIDTH), 0.01),
      "ln2_w": jnp.ones((Ly, 1, WIDTH), f32) + nrm(ks[14], (Ly, 1, WIDTH), 0.01),
      "ln2_b": nrm(ks[15], (Ly, 1, WIDTH), 0.01),
      "fc1_w": nrm(ks[16], (Ly, WIDTH, MLP_DIM), 0.02).astype(bf16),
      "fc1_b": jnp.zeros((Ly, 1, MLP_DIM), f32),
      "fc2_w": nrm(ks[17], (Ly, MLP_DIM, WIDTH), 0.02).astype(bf16),
      "fc2_b": jnp.zeros((Ly, 1, WIDTH), f32),
  }


# ----------------------------- main -------------------------------------------
if __name__ == "__main__":
  key = jax.random.PRNGKey(0)
  k_param, k_prompt, k_tok = jax.random.split(key, 3)

  params = init_params(k_param)

  # prompts: learned prompt embeddings, (N, L, D)
  prompts = 0.1 * jax.random.normal(k_prompt, (N_BATCH, SEQ_LEN, WIDTH), jnp.float32)

  # tokenized_prompts: int tokens with an "EOT" token (large value) marking argmax pos
  tokens = jax.random.randint(k_tok, (N_BATCH, SEQ_LEN), 1, 100, jnp.int32)
  eot_positions = jnp.array([5, 3], jnp.int32)
  tokens = tokens.at[jnp.arange(N_BATCH), eot_positions].set(49407)

  x_out, k_x = text_encoder_forward(params, prompts, tokens)
  x_out = jax.block_until_ready(x_out)
  k_x = jax.block_until_ready(k_x)

  assert x_out.shape == (N_BATCH, SEQ_LEN, WIDTH)
  assert k_x.shape == (N_BATCH, EMBED_DIM)
  assert bool(jnp.all(jnp.isfinite(x_out))) and bool(jnp.all(jnp.isfinite(k_x)))

  # correctness vs pure-JAX reference of the same math (same bf16-quantized weights).
  # tolerance loosened slightly because of the approx softmax reciprocal (EUP).
  x_ref, k_ref = text_encoder_reference(params, prompts, tokens)
  assert bool(jnp.allclose(x_out, x_ref, rtol=1e-2, atol=1e-2)), "x mismatch"
  assert bool(jnp.allclose(k_x, k_ref, rtol=1e-2, atol=1e-2)), "k_x mismatch"

  print("KERNEL_OK")
</pallas_src>

<mosaic_0001>
module attributes {stable_mosaic.version = 11 : i64} {
  func.func @text_encoder_kernel(%arg0: i32, %arg1: i32, %arg2: memref<2xi32, #tpu.memory_space<smem>>, %arg3: memref<1x8x32xf32, #tpu.memory_space<vmem>>, %arg4: memref<8x32xf32, #tpu.memory_space<vmem>>, %arg5: memref<1x1x32xf32, #tpu.memory_space<vmem>>, %arg6: memref<1x1x32xf32, #tpu.memory_space<vmem>>, %arg7: memref<1x32x32xbf16, #tpu.memory_space<vmem>>, %arg8: memref<1x32x32xbf16, #tpu.memory_space<vmem>>, %arg9: memref<1x32x32xbf16, #tpu.memory_space<vmem>>, %arg10: memref<1x1x32xf32, #tpu.memory_space<vmem>>, %arg11: memref<1x1x32xf32, #tpu.memory_space<vmem>>, %arg12: memref<1x1x32xf32, #tpu.memory_space<vmem>>, %arg13: memref<1x4x8x32xbf16, #tpu.memory_space<vmem>>, %arg14: memref<1x1x32xf32, #tpu.memory_space<vmem>>, %arg15: memref<1x1x32xf32, #tpu.memory_space<vmem>>, %arg16: memref<1x1x32xf32, #tpu.memory_space<vmem>>, %arg17: memref<1x32x128xbf16, #tpu.memory_space<vmem>>, %arg18: memref<1x1x128xf32, #tpu.memory_space<vmem>>, %arg19: memref<1x128x32xbf16, #tpu.memory_space<vmem>>, %arg20: memref<1x1x32xf32, #tpu.memory_space<vmem>>, %arg21: memref<1x32xf32, #tpu.memory_space<vmem>>, %arg22: memref<1x32xf32, #tpu.memory_space<vmem>>, %arg23: memref<32x16xbf16, #tpu.memory_space<vmem>>, %arg24: memref<1x8x32xf32, #tpu.memory_space<vmem>>, %arg25: memref<1x1x16xf32, #tpu.memory_space<vmem>>, %arg26: memref<8x32xf32, #tpu.memory_space<vmem>>) attributes {dimension_semantics = [#tpu.dimension_semantics<parallel>, #tpu.dimension_semantics<arbitrary>], iteration_bounds = array<i64: 2, 2>, scalar_prefetch = 1 : i64, scratch_operands = 1 : i64, tpu.core_type = #tpu.core_type<tc>, window_params = [{transform_indices = @transform_0, window_bounds = array<i64: 1, 8, 32>}, {pipeline_mode = #tpu.pipeline_mode<synchronous>, transform_indices = @transform_1, window_bounds = array<i64: 8, 32>}, {transform_indices = @transform_2, window_bounds = array<i64: 1, 1, 32>}, {transform_indices = @transform_3, window_bounds = array<i64: 1, 1, 32>}, {transform_indices = @transform_4, window_bounds = array<i64: 1, 32, 32>}, {transform_indices = @transform_5, window_bounds = array<i64: 1, 32, 32>}, {transform_indices = @transform_6, window_bounds = array<i64: 1, 32, 32>}, {transform_indices = @transform_7, window_bounds = array<i64: 1, 1, 32>}, {transform_indices = @transform_8, window_bounds = array<i64: 1, 1, 32>}, {transform_indices = @transform_9, window_bounds = array<i64: 1, 1, 32>}, {transform_indices = @transform_10, window_bounds = array<i64: 1, 4, 8, 32>}, {transform_indices = @transform_11, window_bounds = array<i64: 1, 1, 32>}, {transform_indices = @transform_12, window_bounds = array<i64: 1, 1, 32>}, {transform_indices = @transform_13, window_bounds = array<i64: 1, 1, 32>}, {transform_indices = @transform_14, window_bounds = array<i64: 1, 32, 128>}, {transform_indices = @transform_15, window_bounds = array<i64: 1, 1, 128>}, {transform_indices = @transform_16, window_bounds = array<i64: 1, 128, 32>}, {transform_indices = @transform_17, window_bounds = array<i64: 1, 1, 32>}, {pipeline_mode = #tpu.pipeline_mode<synchronous>, transform_indices = @transform_18, window_bounds = array<i64: 1, 32>}, {pipeline_mode = #tpu.pipeline_mode<synchronous>, transform_indices = @transform_19, window_bounds = array<i64: 1, 32>}, {pipeline_mode = #tpu.pipeline_mode<synchronous>, transform_indices = @transform_20, window_bounds = array<i64: 32, 16>}, {transform_indices = @transform_21, window_bounds = array<i64: 1, 8, 32>}, {transform_indices = @transform_22, window_bounds = array<i64: 1, 1, 16>}]} {
    %c0_i32 = arith.constant 0 : i32
    %0 = arith.cmpi eq, %arg1, %c0_i32 : i32
    %1 = arith.extui %0 : i1 to i32
    %c0_i32_0 = arith.constant 0 : i32
    %2 = arith.cmpi ne, %1, %c0_i32_0 : i32
    scf.if %2 {
      %c0_79 = arith.constant 0 : index
      %c0_80 = arith.constant 0 : index
      %c0_81 = arith.constant 0 : index
      %169 = vector.load %arg3[%c0_79, %c0_80, %c0_81] : memref<1x8x32xf32, #tpu.memory_space<vmem>>, vector<1x8x32xf32>
      %170 = vector.shape_cast %169 : vector<1x8x32xf32> to vector<8x32xf32>
      %c0_82 = arith.constant 0 : index
      %c0_83 = arith.constant 0 : index
      %171 = vector.load %arg4[%c0_82, %c0_83] : memref<8x32xf32, #tpu.memory_space<vmem>>, vector<8x32xf32>
      %172 = arith.addf %170, %171 : vector<8x32xf32>
      %c0_84 = arith.constant 0 : index
      %c0_85 = arith.constant 0 : index
      %173 = vector.load %arg26[%c0_84, %c0_85] : memref<8x32xf32, #tpu.memory_space<vmem>>, vector<8x32xf32>
      tpu.vector_store %arg26[%c0_84, %c0_85], %172 {strides = array<i32>} : memref<8x32xf32, #tpu.memory_space<vmem>>, vector<8x32xf32>,
    } else {
    }
    %c0 = arith.constant 0 : index
    %c0_1 = arith.constant 0 : index
    %3 = vector.load %arg26[%c0, %c0_1] : memref<8x32xf32, #tpu.memory_space<vmem>>, vector<8x32xf32>
    %4 = tpu.iota {dimensions = array<i32: 0>} : vector<8x8xi32>
    %5 = tpu.iota {dimensions = array<i32: 1>} : vector<8x8xi32>
    %6 = arith.cmpi sgt, %5, %4 : vector<8x8xi32>
    %cst = arith.constant -1.000000e+30 : f32
    %cst_2 = arith.constant 0.000000e+00 : f32
    %7 = vector.broadcast %cst : f32 to vector<8x8xf32>
    %8 = vector.broadcast %cst_2 : f32 to vector<8x8xf32>
    %9 = arith.select %6, %7, %8 : vector<8x8xi1>, vector<8x8xf32>
    %cst_3 = arith.constant dense<0.000000e+00> : vector<8xf32>
    %10 = vector.multi_reduction <add>, %3, %cst_3 [1] : vector<8x32xf32> to vector<8xf32>
    %11 = vector.shape_cast %10 : vector<8xf32> to vector<8x1xf32>
    %cst_4 = arith.constant 3.200000e+01 : f32
    %12 = vector.broadcast %cst_4 : f32 to vector<8x1xf32>
    %13 = arith.divf %11, %12 : vector<8x1xf32>
    %14 = vector.broadcast %13 : vector<8x1xf32> to vector<8x32xf32>
    %15 = arith.subf %3, %14 : vector<8x32xf32>
    %16 = arith.mulf %15, %15 : vector<8x32xf32>
    %cst_5 = arith.constant dense<0.000000e+00> : vector<8xf32>
    %17 = vector.multi_reduction <add>, %16, %cst_5 [1] : vector<8x32xf32> to vector<8xf32>
    %18 = vector.shape_cast %17 : vector<8xf32> to vector<8x1xf32>
    %cst_6 = arith.constant 3.200000e+01 : f32
    %19 = vector.broadcast %cst_6 : f32 to vector<8x1xf32>
    %20 = arith.divf %18, %19 : vector<8x1xf32>
    %21 = vector.broadcast %13 : vector<8x1xf32> to vector<8x32xf32>
    %22 = arith.subf %3, %21 : vector<8x32xf32>
    %cst_7 = arith.constant 9.99999974E-6 : f32
    %23 = vector.broadcast %cst_7 : f32 to vector<8x1xf32>
    %24 = arith.addf %20, %23 : vector<8x1xf32>
    %25 = math.rsqrt %24 : vector<8x1xf32>
    %26 = vector.broadcast %25 : vector<8x1xf32> to vector<8x32xf32>
    %27 = arith.mulf %22, %26 : vector<8x32xf32>
    %c0_8 = arith.constant 0 : index
    %c0_9 = arith.constant 0 : index
    %c0_10 = arith.constant 0 : index
    %28 = vector.load %arg5[%c0_8, %c0_9, %c0_10] : memref<1x1x32xf32, #tpu.memory_space<vmem>>, vector<1x1x32xf32>
    %29 = vector.shape_cast %28 : vector<1x1x32xf32> to vector<1x32xf32>
    %30 = vector.broadcast %29 : vector<1x32xf32> to vector<8x32xf32>
    %31 = arith.mulf %27, %30 : vector<8x32xf32>
    %c0_11 = arith.constant 0 : index
    %c0_12 = arith.constant 0 : index
    %c0_13 = arith.constant 0 : index
    %32 = vector.load %arg6[%c0_11, %c0_12, %c0_13] : memref<1x1x32xf32, #tpu.memory_space<vmem>>, vector<1x1x32xf32>
    %33 = vector.shape_cast %32 : vector<1x1x32xf32> to vector<1x32xf32>
    %34 = vector.broadcast %33 : vector<1x32xf32> to vector<8x32xf32>
    %35 = arith.addf %31, %34 : vector<8x32xf32>
    %c0_14 = arith.constant 0 : index
    %c0_15 = arith.constant 0 : index
    %c0_16 = arith.constant 0 : index
    %36 = vector.load %arg7[%c0_14, %c0_15, %c0_16] : memref<1x32x32xbf16, #tpu.memory_space<vmem>>, vector<1x32x32xbf16>
    %37 = vector.shape_cast %36 : vector<1x32x32xbf16> to vector<32x32xbf16>
    %38 = arith.extf %37 : vector<32x32xbf16> to vector<32x32xf32>
    %cst_17 = arith.constant dense<0.000000e+00> : vector<8x32xf32>
    %39 = tpu.matmul %35, %38, %cst_17 {dimension_numbers = #tpu.dot_dimension_numbers<[1], [0], [0], [1], [0, 0, 1, 1], [], []>} : vector<8x32xf32>, vector<32x32xf32>, vector<8x32xf32> -> vector<8x32xf32>
    %c0_18 = arith.constant 0 : index
    %c0_19 = arith.constant 0 : index
    %c0_20 = arith.constant 0 : index
    %40 = vector.load %arg10[%c0_18, %c0_19, %c0_20] : memref<1x1x32xf32, #tpu.memory_space<vmem>>, vector<1x1x32xf32>
    %41 = vector.shape_cast %40 : vector<1x1x32xf32> to vector<1x32xf32>
    %42 = vector.broadcast %41 : vector<1x32xf32> to vector<8x32xf32>
    %43 = arith.addf %39, %42 : vector<8x32xf32>
    %cst_21 = arith.constant 0.353553385 : f32
    %44 = vector.broadcast %cst_21 : f32 to vector<8x32xf32>
    %45 = arith.mulf %43, %44 : vector<8x32xf32>
    %c0_22 = arith.constant 0 : index
    %c0_23 = arith.constant 0 : index
    %c0_24 = arith.constant 0 : index
    %46 = vector.load %arg8[%c0_22, %c0_23, %c0_24] : memref<1x32x32xbf16, #tpu.memory_space<vmem>>, vector<1x32x32xbf16>
    %47 = vector.shape_cast %46 : vector<1x32x32xbf16> to vector<32x32xbf16>
    %48 = arith.extf %47 : vector<32x32xbf16> to vector<32x32xf32>
    %cst_25 = arith.constant dense<0.000000e+00> : vector<8x32xf32>
    %49 = tpu.matmul %35, %48, %cst_25 {dimension_numbers = #tpu.dot_dimension_numbers<[1], [0], [0], [1], [0, 0, 1, 1], [], []>} : vector<8x32xf32>, vector<32x32xf32>, vector<8x32xf32> -> vector<8x32xf32>
    %c0_26 = arith.constant 0 : index
    %c0_27 = arith.constant 0 : index
    %c0_28 = arith.constant 0 : index
    %50 = vector.load %arg11[%c0_26, %c0_27, %c0_28] : memref<1x1x32xf32, #tpu.memory_space<vmem>>, vector<1x1x32xf32>
    %51 = vector.shape_cast %50 : vector<1x1x32xf32> to vector<1x32xf32>
    %52 = vector.broadcast %51 : vector<1x32xf32> to vector<8x32xf32>
    %53 = arith.addf %49, %52 : vector<8x32xf32>
    %c0_29 = arith.constant 0 : index
    %c0_30 = arith.constant 0 : index
    %c0_31 = arith.constant 0 : index
    %54 = vector.load %arg9[%c0_29, %c0_30, %c0_31] : memref<1x32x32xbf16, #tpu.memory_space<vmem>>, vector<1x32x32xbf16>
    %55 = vector.shape_cast %54 : vector<1x32x32xbf16> to vector<32x32xbf16>
    %56 = arith.extf %55 : vector<32x32xbf16> to vector<32x32xf32>
    %cst_32 = arith.constant dense<0.000000e+00> : vector<8x32xf32>
    %57 = tpu.matmul %35, %56, %cst_32 {dimension_numbers = #tpu.dot_dimension_numbers<[1], [0], [0], [1], [0, 0, 1, 1], [], []>} : vector<8x32xf32>, vector<32x32xf32>, vector<8x32xf32> -> vector<8x32xf32>
    %c0_33 = arith.constant 0 : index
    %c0_34 = arith.constant 0 : index
    %c0_35 = arith.constant 0 : index
    %58 = vector.load %arg12[%c0_33, %c0_34, %c0_35] : memref<1x1x32xf32, #tpu.memory_space<vmem>>, vector<1x1x32xf32>
    %59 = vector.shape_cast %58 : vector<1x1x32xf32> to vector<1x32xf32>
    %60 = vector.broadcast %59 : vector<1x32xf32> to vector<8x32xf32>
    %61 = arith.addf %57, %60 : vector<8x32xf32>
    %62 = vector.extract_strided_slice %45 {offsets = [0, 0], sizes = [8, 8], strides = [1, 1]} : vector<8x32xf32> to vector<8x8xf32>
    %63 = vector.extract_strided_slice %45 {offsets = [0, 8], sizes = [8, 8], strides = [1, 1]} : vector<8x32xf32> to vector<8x8xf32>
    %64 = vector.extract_strided_slice %45 {offsets = [0, 16], sizes = [8, 8], strides = [1, 1]} : vector<8x32xf32> to vector<8x8xf32>
    %65 = vector.extract_strided_slice %45 {offsets = [0, 24], sizes = [8, 8], strides = [1, 1]} : vector<8x32xf32> to vector<8x8xf32>
    %66 = vector.shape_cast %62 : vector<8x8xf32> to vector<1x8x8xf32>
    %67 = vector.shape_cast %63 : vector<8x8xf32> to vector<1x8x8xf32>
    %68 = vector.shape_cast %64 : vector<8x8xf32> to vector<1x8x8xf32>
    %69 = vector.shape_cast %65 : vector<8x8xf32> to vector<1x8x8xf32>
    %70 = tpu.concatenate %66, %67, %68, %69 in 0 : vector<1x8x8xf32>, vector<1x8x8xf32>, vector<1x8x8xf32>, vector<1x8x8xf32> -> vector<4x8x8xf32>
    %71 = vector.extract_strided_slice %53 {offsets = [0, 0], sizes = [8, 8], strides = [1, 1]} : vector<8x32xf32> to vector<8x8xf32>
    %72 = vector.extract_strided_slice %53 {offsets = [0, 8], sizes = [8, 8], strides = [1, 1]} : vector<8x32xf32> to vector<8x8xf32>
    %73 = vector.extract_strided_slice %53 {offsets = [0, 16], sizes = [8, 8], strides = [1, 1]} : vector<8x32xf32> to vector<8x8xf32>
    %74 = vector.extract_strided_slice %53 {offsets = [0, 24], sizes = [8, 8], strides = [1, 1]} : vector<8x32xf32> to vector<8x8xf32>
    %75 = vector.shape_cast %71 : vector<8x8xf32> to vector<1x8x8xf32>
    %76 = vector.shape_cast %72 : vector<8x8xf32> to vector<1x8x8xf32>
    %77 = vector.shape_cast %73 : vector<8x8xf32> to vector<1x8x8xf32>
    %78 = vector.shape_cast %74 : vector<8x8xf32> to vector<1x8x8xf32>
    %79 = tpu.concatenate %75, %76, %77, %78 in 0 : vector<1x8x8xf32>, vector<1x8x8xf32>, vector<1x8x8xf32>, vector<1x8x8xf32> -> vector<4x8x8xf32>
    %80 = vector.extract_strided_slice %61 {offsets = [0, 0], sizes = [8, 8], strides = [1, 1]} : vector<8x32xf32> to vector<8x8xf32>
    %81 = vector.extract_strided_slice %61 {offsets = [0, 8], sizes = [8, 8], strides = [1, 1]} : vector<8x32xf32> to vector<8x8xf32>
    %82 = vector.extract_strided_slice %61 {offsets = [0, 16], sizes = [8, 8], strides = [1, 1]} : vector<8x32xf32> to vector<8x8xf32>
    %83 = vector.extract_strided_slice %61 {offsets = [0, 24], sizes = [8, 8], strides = [1, 1]} : vector<8x32xf32> to vector<8x8xf32>
    %84 = vector.shape_cast %80 : vector<8x8xf32> to vector<1x8x8xf32>
    %85 = vector.shape_cast %81 : vector<8x8xf32> to vector<1x8x8xf32>
    %86 = vector.shape_cast %82 : vector<8x8xf32> to vector<1x8x8xf32>
    %87 = vector.shape_cast %83 : vector<8x8xf32> to vector<1x8x8xf32>
    %88 = tpu.concatenate %84, %85, %86, %87 in 0 : vector<1x8x8xf32>, vector<1x8x8xf32>, vector<1x8x8xf32>, vector<1x8x8xf32> -> vector<4x8x8xf32>
    "tpu.trace_start"() <{level = 10 : i32, message = "hqd,hkd->hqk"}> : () -> ()
    %cst_36 = arith.constant dense<0.000000e+00> : vector<4x8x8xf32>
    %89 = tpu.matmul %70, %79, %cst_36 {dimension_numbers = #tpu.dot_dimension_numbers<[2], [2], [1], [1], [0, 0, 0, 1, 1, 1], [0], [0]>} : vector<4x8x8xf32>, vector<4x8x8xf32>, vector<4x8x8xf32> -> vector<4x8x8xf32>
    "tpu.trace_stop"() : () -> ()
    %90 = vector.shape_cast %9 : vector<8x8xf32> to vector<1x8x8xf32>
    %91 = vector.broadcast %90 : vector<1x8x8xf32> to vector<4x8x8xf32>
    %92 = arith.addf %89, %91 : vector<4x8x8xf32>
    %cst_37 = arith.constant dense<0xFF800000> : vector<4x8xf32>
    %93 = vector.multi_reduction <maximumf>, %92, %cst_37 [2] : vector<4x8x8xf32> to vector<4x8xf32>
    %94 = vector.shape_cast %93 : vector<4x8xf32> to vector<4x8x1xf32>
    %95 = vector.broadcast %94 : vector<4x8x1xf32> to vector<4x8x8xf32>
    %96 = arith.subf %92, %95 : vector<4x8x8xf32>
    %97 = math.exp %96 : vector<4x8x8xf32>
    %cst_38 = arith.constant dense<0.000000e+00> : vector<4x8xf32>
    %98 = vector.multi_reduction <add>, %97, %cst_38 [2] : vector<4x8x8xf32> to vector<4x8xf32>
    %99 = vector.shape_cast %98 : vector<4x8xf32> to vector<4x8x1xf32>
    %100 = tpu.reciprocal %99 {approx = true} : vector<4x8x1xf32> -> vector<4x8x1xf32>
    %101 = vector.broadcast %100 : vector<4x8x1xf32> to vector<4x8x8xf32>
    %102 = arith.mulf %97, %101 : vector<4x8x8xf32>
    "tpu.trace_start"() <{level = 10 : i32, message = "hqk,hkd->hqd"}> : () -> ()
    %cst_39 = arith.constant dense<0.000000e+00> : vector<4x8x8xf32>
    %103 = tpu.matmul %102, %88, %cst_39 {dimension_numbers = #tpu.dot_dimension_numbers<[2], [1], [1], [2], [0, 0, 0, 1, 1, 2], [0], [0]>} : vector<4x8x8xf32>, vector<4x8x8xf32>, vector<4x8x8xf32> -> vector<4x8x8xf32>
    "tpu.trace_stop"() : () -> ()
    %c0_40 = arith.constant 0 : index
    %c0_41 = arith.constant 0 : index
    %c0_42 = arith.constant 0 : index
    %c0_43 = arith.constant 0 : index
    %104 = vector.load %arg13[%c0_40, %c0_41, %c0_42, %c0_43] : memref<1x4x8x32xbf16, #tpu.memory_space<vmem>>, vector<1x4x8x32xbf16>
    %105 = vector.shape_cast %104 : vector<1x4x8x32xbf16> to vector<4x8x32xbf16>
    %106 = arith.extf %105 : vector<4x8x32xbf16> to vector<4x8x32xf32>
    "tpu.trace_start"() <{level = 10 : i32, message = "hld,hdo->hlo"}> : () -> ()
    %cst_44 = arith.constant dense<0.000000e+00> : vector<4x8x32xf32>
    %107 = tpu.matmul %103, %106, %cst_44 {dimension_numbers = #tpu.dot_dimension_numbers<[2], [1], [1], [2], [0, 0, 0, 1, 1, 2], [0], [0]>} : vector<4x8x8xf32>, vector<4x8x32xf32>, vector<4x8x32xf32> -> vector<4x8x32xf32>
    "tpu.trace_stop"() : () -> ()
    %cst_45 = arith.constant dense<0.000000e+00> : vector<8x32xf32>
    %108 = vector.multi_reduction <add>, %107, %cst_45 [0] : vector<4x8x32xf32> to vector<8x32xf32>
    %109 = arith.addf %3, %108 : vector<8x32xf32>
    %c0_46 = arith.constant 0 : index
    %c0_47 = arith.constant 0 : index
    %c0_48 = arith.constant 0 : index
    %110 = vector.load %arg14[%c0_46, %c0_47, %c0_48] : memref<1x1x32xf32, #tpu.memory_space<vmem>>, vector<1x1x32xf32>
    %111 = vector.shape_cast %110 : vector<1x1x32xf32> to vector<1x32xf32>
    %112 = vector.broadcast %111 : vector<1x32xf32> to vector<8x32xf32>
    %113 = arith.addf %109, %112 : vector<8x32xf32>
    %cst_49 = arith.constant dense<0.000000e+00> : vector<8xf32>
    %114 = vector.multi_reduction <add>, %113, %cst_49 [1] : vector<8x32xf32> to vector<8xf32>
    %115 = vector.shape_cast %114 : vector<8xf32> to vector<8x1xf32>
    %cst_50 = arith.constant 3.200000e+01 : f32
    %116 = vector.broadcast %cst_50 : f32 to vector<8x1xf32>
    %117 = arith.divf %115, %116 : vector<8x1xf32>
    %118 = vector.broadcast %117 : vector<8x1xf32> to vector<8x32xf32>
    %119 = arith.subf %113, %118 : vector<8x32xf32>
    %120 = arith.mulf %119, %119 : vector<8x32xf32>
    %cst_51 = arith.constant dense<0.000000e+00> : vector<8xf32>
    %121 = vector.multi_reduction <add>, %120, %cst_51 [1] : vector<8x32xf32> to vector<8xf32>
    %122 = vector.shape_cast %121 : vector<8xf32> to vector<8x1xf32>
    %cst_52 = arith.constant 3.200000e+01 : f32
    %123 = vector.broadcast %cst_52 : f32 to vector<8x1xf32>
    %124 = arith.divf %122, %123 : vector<8x1xf32>
    %125 = vector.broadcast %117 : vector<8x1xf32> to vector<8x32xf32>
    %126 = arith.subf %113, %125 : vector<8x32xf32>
    %cst_53 = arith.constant 9.99999974E-6 : f32
    %127 = vector.broadcast %cst_53 : f32 to vector<8x1xf32>
    %128 = arith.addf %124, %127 : vector<8x1xf32>
    %129 = math.rsqrt %128 : vector<8x1xf32>
    %130 = vector.broadcast %129 : vector<8x1xf32> to vector<8x32xf32>
    %131 = arith.mulf %126, %130 : vector<8x32xf32>
    %c0_54 = arith.constant 0 : index
    %c0_55 = arith.constant 0 : index
    %c0_56 = arith.constant 0 : index
    %132 = vector.load %arg15[%c0_54, %c0_55, %c0_56] : memref<1x1x32xf32, #tpu.memory_space<vmem>>, vector<1x1x32xf32>
    %133 = vector.shape_cast %132 : vector<1x1x32xf32> to vector<1x32xf32>
    %134 = vector.broadcast %133 : vector<1x32xf32> to vector<8x32xf32>
    %135 = arith.mulf %131, %134 : vector<8x32xf32>
    %c0_57 = arith.constant 0 : index
    %c0_58 = arith.constant 0 : index
    %c0_59 = arith.constant 0 : index
    %136 = vector.load %arg16[%c0_57, %c0_58, %c0_59] : memref<1x1x32xf32, #tpu.memory_space<vmem>>, vector<1x1x32xf32>
    %137 = vector.shape_cast %136 : vector<1x1x32xf32> to vector<1x32xf32>
    %138 = vector.broadcast %137 : vector<1x32xf32> to vector<8x32xf32>
    %139 = arith.addf %135, %138 : vector<8x32xf32>
    %c0_60 = arith.constant 0 : index
    %c0_61 = arith.constant 0 : index
    %c0_62 = arith.constant 0 : index
    %140 = vector.load %arg17[%c0_60, %c0_61, %c0_62] : memref<1x32x128xbf16, #tpu.memory_space<vmem>>, vector<1x32x128xbf16>
    %141 = vector.shape_cast %140 : vector<1x32x128xbf16> to vector<32x128xbf16>
    %142 = arith.extf %141 : vector<32x128xbf16> to vector<32x128xf32>
    %cst_63 = arith.constant dense<0.000000e+00> : vector<8x128xf32>
    %143 = tpu.matmul %139, %142, %cst_63 {dimension_numbers = #tpu.dot_dimension_numbers<[1], [0], [0], [1], [0, 0, 1, 1], [], []>} : vector<8x32xf32>, vector<32x128xf32>, vector<8x128xf32> -> vector<8x128xf32>
    %c0_64 = arith.constant 0 : index
    %c0_65 = arith.constant 0 : index
    %c0_66 = arith.constant 0 : index
    %144 = vector.load %arg18[%c0_64, %c0_65, %c0_66] : memref<1x1x128xf32, #tpu.memory_space<vmem>>, vector<1x1x128xf32>
    %145 = vector.shape_cast %144 : vector<1x1x128xf32> to vector<1x128xf32>
    %146 = vector.broadcast %145 : vector<1x128xf32> to vector<8x128xf32>
    %147 = arith.addf %143, %146 : vector<8x128xf32>
    %cst_67 = arith.constant 1.702000e+00 : f32
    %148 = vector.broadcast %cst_67 : f32 to vector<8x128xf32>
    %149 = arith.mulf %148, %147 : vector<8x128xf32>
    %150 = arith.negf %149 : vector<8x128xf32>
    %151 = math.exp %150 : vector<8x128xf32>
    %cst_68 = arith.constant 1.000000e+00 : f32
    %152 = vector.broadcast %cst_68 : f32 to vector<8x128xf32>
    %153 = arith.addf %152, %151 : vector<8x128xf32>
    %154 = arith.divf %152, %153 : vector<8x128xf32>
    %155 = arith.mulf %147, %154 : vector<8x128xf32>
    %c0_69 = arith.constant 0 : index
    %c0_70 = arith.constant 0 : index
    %c0_71 = arith.constant 0 : index
    %156 = vector.load %arg19[%c0_69, %c0_70, %c0_71] : memref<1x128x32xbf16, #tpu.memory_space<vmem>>, vector<1x128x32xbf16>
    %157 = vector.shape_cast %156 : vector<1x128x32xbf16> to vector<128x32xbf16>
    %158 = arith.extf %157 : vector<128x32xbf16> to vector<128x32xf32>
    %cst_72 = arith.constant dense<0.000000e+00> : vector<8x32xf32>
    %159 = tpu.matmul %155, %158, %cst_72 {dimension_numbers = #tpu.dot_dimension_numbers<[1], [0], [0], [1], [0, 0, 1, 1], [], []>} : vector<8x128xf32>, vector<128x32xf32>, vector<8x32xf32> -> vector<8x32xf32>
    %c0_73 = arith.constant 0 : index
    %c0_74 = arith.constant 0 : index
    %c0_75 = arith.constant 0 : index
    %160 = vector.load %arg20[%c0_73, %c0_74, %c0_75] : memref<1x1x32xf32, #tpu.memory_space<vmem>>, vector<1x1x32xf32>
    %161 = vector.shape_cast %160 : vector<1x1x32xf32> to vector<1x32xf32>
    %162 = vector.broadcast %161 : vector<1x32xf32> to vector<8x32xf32>
    %163 = arith.addf %159, %162 : vector<8x32xf32>
    %164 = arith.addf %113, %163 : vector<8x32xf32>
    %c0_76 = arith.constant 0 : index
    %c0_77 = arith.constant 0 : index
    %165 = vector.load %arg26[%c0_76, %c0_77] : memref<8x32xf32, #tpu.memory_space<vmem>>, vector<8x32xf32>
    tpu.vector_store %arg26[%c0_76, %c0_77], %164 {strides = array<i32>} : memref<8x32xf32, #tpu.memory_space<vmem>>, vector<8x32xf32>,
    %c1_i32 = arith.constant 1 : i32
    %166 = arith.cmpi eq, %arg1, %c1_i32 : i32
    %167 = arith.extui %166 : i1 to i32
    %c0_i32_78 = arith.constant 0 : i32
    %168 = arith.cmpi ne, %167, %c0_i32_78 : i32
    scf.if %168 {
      %cst_79 = arith.constant dense<0.000000e+00> : vector<8xf32>
      %169 = vector.multi_reduction <add>, %164, %cst_79 [1] : vector<8x32xf32> to vector<8xf32>
      %170 = vector.shape_cast %169 : vector<8xf32> to vector<8x1xf32>
      %cst_80 = arith.constant 3.200000e+01 : f32
      %171 = vector.broadcast %cst_80 : f32 to vector<8x1xf32>
      %172 = arith.divf %170, %171 : vector<8x1xf32>
      %173 = vector.broadcast %172 : vector<8x1xf32> to vector<8x32xf32>
      %174 = arith.subf %164, %173 : vector<8x32xf32>
      %175 = arith.mulf %174, %174 : vector<8x32xf32>
      %cst_81 = arith.constant dense<0.000000e+00> : vector<8xf32>
      %176 = vector.multi_reduction <add>, %175, %cst_81 [1] : vector<8x32xf32> to vector<8xf32>
      %177 = vector.shape_cast %176 : vector<8xf32> to vector<8x1xf32>
      %cst_82 = arith.constant 3.200000e+01 : f32
      %178 = vector.broadcast %cst_82 : f32 to vector<8x1xf32>
      %179 = arith.divf %177, %178 : vector<8x1xf32>
      %180 = vector.broadcast %172 : vector<8x1xf32> to vector<8x32xf32>
      %181 = arith.subf %164, %180 : vector<8x32xf32>
      %cst_83 = arith.constant 9.99999974E-6 : f32
      %182 = vector.broadcast %cst_83 : f32 to vector<8x1xf32>
      %183 = arith.addf %179, %182 : vector<8x1xf32>
      %184 = math.rsqrt %183 : vector<8x1xf32>
      %185 = vector.broadcast %184 : vector<8x1xf32> to vector<8x32xf32>
      %186 = arith.mulf %181, %185 : vector<8x32xf32>
      %c0_84 = arith.constant 0 : index
      %c0_85 = arith.constant 0 : index
      %187 = vector.load %arg21[%c0_84, %c0_85] : memref<1x32xf32, #tpu.memory_space<vmem>>, vector<1x32xf32>
      %188 = vector.broadcast %187 : vector<1x32xf32> to vector<8x32xf32>
      %189 = arith.mulf %186, %188 : vector<8x32xf32>
      %c0_86 = arith.constant 0 : index
      %c0_87 = arith.constant 0 : index
      %190 = vector.load %arg22[%c0_86, %c0_87] : memref<1x32xf32, #tpu.memory_space<vmem>>, vector<1x32xf32>
      %191 = vector.broadcast %190 : vector<1x32xf32> to vector<8x32xf32>
      %192 = arith.addf %189, %191 : vector<8x32xf32>
      %c0_88 = arith.constant 0 : index
      %c0_89 = arith.constant 0 : index
      %c0_90 = arith.constant 0 : index
      %193 = vector.load %arg24[%c0_88, %c0_89, %c0_90] : memref<1x8x32xf32, #tpu.memory_space<vmem>>, vector<1x8x32xf32>
      %194 = vector.shape_cast %193 : vector<1x8x32xf32> to vector<8x32xf32>
      %195 = vector.shape_cast %192 : vector<8x32xf32> to vector<1x8x32xf32>
      tpu.vector_store %arg24[%c0_88, %c0_89, %c0_90], %195 {strides = array<i32>} : memref<1x8x32xf32, #tpu.memory_space<vmem>>, vector<1x8x32xf32>,
      %196 = tpu.iota {dimensions = array<i32: 0>} : vector<8x1xi32>
      %197 = arith.index_cast %arg0 : i32 to index
      %198 = memref.load %arg2[%197] : memref<2xi32, #tpu.memory_space<smem>>
      %199 = vector.broadcast %198 : i32 to vector<8x1xi32>
      %200 = arith.cmpi eq, %196, %199 : vector<8x1xi32>
      %cst_91 = arith.constant 0.000000e+00 : f32
      %201 = vector.shape_cast %200 : vector<8x1xi1> to vector<8x1xi1>
      %202 = vector.broadcast %201 : vector<8x1xi1> to vector<8x32xi1>
      %203 = vector.broadcast %cst_91 : f32 to vector<8x32xf32>
      %204 = arith.select %202, %192, %203 : vector<8x32xi1>, vector<8x32xf32>
      %cst_92 = arith.constant dense<0.000000e+00> : vector<32xf32>
      %205 = vector.multi_reduction <add>, %204, %cst_92 [0] : vector<8x32xf32> to vector<32xf32>
      %206 = vector.shape_cast %205 : vector<32xf32> to vector<1x32xf32>
      %c0_93 = arith.constant 0 : index
      %c0_94 = arith.constant 0 : index
      %207 = vector.load %arg23[%c0_93, %c0_94] : memref<32x16xbf16, #tpu.memory_space<vmem>>, vector<32x16xbf16>
      %208 = arith.extf %207 : vector<32x16xbf16> to vector<32x16xf32>
      %cst_95 = arith.constant dense<0.000000e+00> : vector<1x16xf32>
      %209 = tpu.matmul %206, %208, %cst_95 {dimension_numbers = #tpu.dot_dimension_numbers<[1], [0], [0], [1], [0, 0, 1, 1], [], []>} : vector<1x32xf32>, vector<32x16xf32>, vector<1x16xf32> -> vector<1x16xf32>
      %c0_96 = arith.constant 0 : index
      %c0_97 = arith.constant 0 : index
      %c0_98 = arith.constant 0 : index
      %210 = vector.load %arg25[%c0_96, %c0_97, %c0_98] : memref<1x1x16xf32, #tpu.memory_space<vmem>>, vector<1x1x16xf32>
      %211 = vector.shape_cast %210 : vector<1x1x16xf32> to vector<1x16xf32>
      %212 = vector.shape_cast %209 : vector<1x16xf32> to vector<1x1x16xf32>
      tpu.vector_store %arg25[%c0_96, %c0_97, %c0_98], %212 {strides = array<i32>} : memref<1x1x16xf32, #tpu.memory_space<vmem>>, vector<1x1x16xf32>,
    } else {
    }
    return
  }
  func.func @transform_0(%arg0: i32, %arg1: i32, %arg2: memref<2xi32, #tpu.memory_space<smem>>) -> (i32, i32, i32) {
    %c0_i32 = arith.constant 0 : i32
    %c0_i32_0 = arith.constant 0 : i32
    %c0_i32_1 = arith.constant 0 : i32
    return %arg0, %c0_i32, %c0_i32_0 : i32, i32, i32
  }
  func.func @transform_1(%arg0: i32, %arg1: i32, %arg2: memref<2xi32, #tpu.memory_space<smem>>) -> (i32, i32) {
    %c0_i32 = arith.constant 0 : i32
    %c0_i32_0 = arith.constant 0 : i32
    %c0_i32_1 = arith.constant 0 : i32
    return %c0_i32, %c0_i32_0 : i32, i32
  }
  func.func @transform_2(%arg0: i32, %arg1: i32, %arg2: memref<2xi32, #tpu.memory_space<smem>>) -> (i32, i32, i32) {
    %c0_i32 = arith.constant 0 : i32
    %c0_i32_0 = arith.constant 0 : i32
    %c0_i32_1 = arith.constant 0 : i32
    return %arg1, %c0_i32, %c0_i32_0 : i32, i32, i32
  }
  func.func @transform_3(%arg0: i32, %arg1: i32, %arg2: memref<2xi32, #tpu.memory_space<smem>>) -> (i32, i32, i32) {
    %c0_i32 = arith.constant 0 : i32
    %c0_i32_0 = arith.constant 0 : i32
    %c0_i32_1 = arith.constant 0 : i32
    return %arg1, %c0_i32, %c0_i32_0 : i32, i32, i32
  }
  func.func @transform_4(%arg0: i32, %arg1: i32, %arg2: memref<2xi32, #tpu.memory_space<smem>>) -> (i32, i32, i32) {
    %c0_i32 = arith.constant 0 : i32
    %c0_i32_0 = arith.constant 0 : i32
    %c0_i32_1 = arith.constant 0 : i32
    return %arg1, %c0_i32, %c0_i32_0 : i32, i32, i32
  }
  func.func @transform_5(%arg0: i32, %arg1: i32, %arg2: memref<2xi32, #tpu.memory_space<smem>>) -> (i32, i32, i32) {
    %c0_i32 = arith.constant 0 : i32
    %c0_i32_0 = arith.constant 0 : i32
    %c0_i32_1 = arith.constant 0 : i32
    return %arg1, %c0_i32, %c0_i32_0 : i32, i32, i32
  }
  func.func @transform_6(%arg0: i32, %arg1: i32, %arg2: memref<2xi32, #tpu.memory_space<smem>>) -> (i32, i32, i32) {
    %c0_i32 = arith.constant 0 : i32
    %c0_i32_0 = arith.constant 0 : i32
    %c0_i32_1 = arith.constant 0 : i32
    return %arg1, %c0_i32, %c0_i32_0 : i32, i32, i32
  }
  func.func @transform_7(%arg0: i32, %arg1: i32, %arg2: memref<2xi32, #tpu.memory_space<smem>>) -> (i32, i32, i32) {
    %c0_i32 = arith.constant 0 : i32
    %c0_i32_0 = arith.constant 0 : i32
    %c0_i32_1 = arith.constant 0 : i32
    return %arg1, %c0_i32, %c0_i32_0 : i32, i32, i32
  }
  func.func @transform_8(%arg0: i32, %arg1: i32, %arg2: memref<2xi32, #tpu.memory_space<smem>>) -> (i32, i32, i32) {
    %c0_i32 = arith.constant 0 : i32
    %c0_i32_0 = arith.constant 0 : i32
    %c0_i32_1 = arith.constant 0 : i32
    return %arg1, %c0_i32, %c0_i32_0 : i32, i32, i32
  }
  func.func @transform_9(%arg0: i32, %arg1: i32, %arg2: memref<2xi32, #tpu.memory_space<smem>>) -> (i32, i32, i32) {
    %c0_i32 = arith.constant 0 : i32
    %c0_i32_0 = arith.constant 0 : i32
    %c0_i32_1 = arith.constant 0 : i32
    return %arg1, %c0_i32, %c0_i32_0 : i32, i32, i32
  }
  func.func @transform_10(%arg0: i32, %arg1: i32, %arg2: memref<2xi32, #tpu.memory_space<smem>>) -> (i32, i32, i32, i32) {
    %c0_i32 = arith.constant 0 : i32
    %c0_i32_0 = arith.constant 0 : i32
    %c0_i32_1 = arith.constant 0 : i32
    %c0_i32_2 = arith.constant 0 : i32
    return %arg1, %c0_i32, %c0_i32_0, %c0_i32_1 : i32, i32, i32, i32
  }
  func.func @transform_11(%arg0: i32, %arg1: i32, %arg2: memref<2xi32, #tpu.memory_space<smem>>) -> (i32, i32, i32) {
    %c0_i32 = arith.constant 0 : i32
    %c0_i32_0 = arith.constant 0 : i32
    %c0_i32_1 = arith.constant 0 : i32
    return %arg1, %c0_i32, %c0_i32_0 : i32, i32, i32
  }
  func.func @transform_12(%arg0: i32, %arg1: i32, %arg2: memref<2xi32, #tpu.memory_space<smem>>) -> (i32, i32, i32) {
    %c0_i32 = arith.constant 0 : i32
    %c0_i32_0 = arith.constant 0 : i32
    %c0_i32_1 = arith.constant 0 : i32
    return %arg1, %c0_i32, %c0_i32_0 : i32, i32, i32
  }
  func.func @transform_13(%arg0: i32, %arg1: i32, %arg2: memref<2xi32, #tpu.memory_space<smem>>) -> (i32, i32, i32) {
    %c0_i32 = arith.constant 0 : i32
    %c0_i32_0 = arith.constant 0 : i32
    %c0_i32_1 = arith.constant 0 : i32
    return %arg1, %c0_i32, %c0_i32_0 : i32, i32, i32
  }
  func.func @transform_14(%arg0: i32, %arg1: i32, %arg2: memref<2xi32, #tpu.memory_space<smem>>) -> (i32, i32, i32) {
    %c0_i32 = arith.constant 0 : i32
    %c0_i32_0 = arith.constant 0 : i32
    %c0_i32_1 = arith.constant 0 : i32
    return %arg1, %c0_i32, %c0_i32_0 : i32, i32, i32
  }
  func.func @transform_15(%arg0: i32, %arg1: i32, %arg2: memref<2xi32, #tpu.memory_space<smem>>) -> (i32, i32, i32) {
    %c0_i32 = arith.constant 0 : i32
    %c0_i32_0 = arith.constant 0 : i32
    %c0_i32_1 = arith.constant 0 : i32
    return %arg1, %c0_i32, %c0_i32_0 : i32, i32, i32
  }
  func.func @transform_16(%arg0: i32, %arg1: i32, %arg2: memref<2xi32, #tpu.memory_space<smem>>) -> (i32, i32, i32) {
    %c0_i32 = arith.constant 0 : i32
    %c0_i32_0 = arith.constant 0 : i32
    %c0_i32_1 = arith.constant 0 : i32
    return %arg1, %c0_i32, %c0_i32_0 : i32, i32, i32
  }
  func.func @transform_17(%arg0: i32, %arg1: i32, %arg2: memref<2xi32, #tpu.memory_space<smem>>) -> (i32, i32, i32) {
    %c0_i32 = arith.constant 0 : i32
    %c0_i32_0 = arith.constant 0 : i32
    %c0_i32_1 = arith.constant 0 : i32
    return %arg1, %c0_i32, %c0_i32_0 : i32, i32, i32
  }
  func.func @transform_18(%arg0: i32, %arg1: i32, %arg2: memref<2xi32, #tpu.memory_space<smem>>) -> (i32, i32) {
    %c0_i32 = arith.constant 0 : i32
    %c0_i32_0 = arith.constant 0 : i32
    %c0_i32_1 = arith.constant 0 : i32
    return %c0_i32, %c0_i32_0 : i32, i32
  }
  func.func @transform_19(%arg0: i32, %arg1: i32, %arg2: memref<2xi32, #tpu.memory_space<smem>>) -> (i32, i32) {
    %c0_i32 = arith.constant 0 : i32
    %c0_i32_0 = arith.constant 0 : i32
    %c0_i32_1 = arith.constant 0 : i32
    return %c0_i32, %c0_i32_0 : i32, i32
  }
  func.func @transform_20(%arg0: i32, %arg1: i32, %arg2: memref<2xi32, #tpu.memory_space<smem>>) -> (i32, i32) {
    %c0_i32 = arith.constant 0 : i32
    %c0_i32_0 = arith.constant 0 : i32
    %c0_i32_1 = arith.constant 0 : i32
    return %c0_i32, %c0_i32_0 : i32, i32
  }
  func.func @transform_21(%arg0: i32, %arg1: i32, %arg2: memref<2xi32, #tpu.memory_space<smem>>) -> (i32, i32, i32) {
    %c0_i32 = arith.constant 0 : i32
    %c0_i32_0 = arith.constant 0 : i32
    %c0_i32_1 = arith.constant 0 : i32
    return %arg0, %c0_i32, %c0_i32_0 : i32, i32, i32
  }
  func.func @transform_22(%arg0: i32, %arg1: i32, %arg2: memref<2xi32, #tpu.memory_space<smem>>) -> (i32, i32, i32) {
    %c0_i32 = arith.constant 0 : i32
    %c0_i32_0 = arith.constant 0 : i32
    %c0_i32_1 = arith.constant 0 : i32
    return %arg0, %c0_i32, %c0_i32_0 : i32, i32, i32
  }
}

</mosaic_0001>

<bundles_post_ra>
// kernel: tpu_custom_call.1
= control target key start
LH: loop header
LB: loop body
LE: loop exit
PB: predicated region body
PF: predicated region fallthrough
CT: control target
= control target key end

     0   :  { %s4776_s0 = inlined_call_operand.hbm [shape: s32[2], index: 0, kind: input, shape index: {}]   ;;  %s4777_s1 = inlined_call_operand.vmem [shape: f32[2,8,32], index: 1, kind: input, shape index: {}]   ;;  %s4778_s2 = inlined_call_operand.vmem [shape: f32[8,32], index: 2, kind: input, shape index: {}]   ;;  %s4779_s3 = inlined_call_operand.hbm [shape: f32[2,1,32], index: 3, kind: input, shape index: {}]   ;;  %s4780_s4 = inlined_call_operand.hbm [shape: f32[2,1,32], index: 4, kind: input, shape index: {}]   ;;  %s4781_s5 = inlined_call_operand.vmem [shape: bf16[2,32,32], index: 5, kind: input, shape index: {}]   ;;  %s4782_s6 = inlined_call_operand.vmem [shape: bf16[2,32,32], index: 6, kind: input, shape index: {}]   ;;  %s4783_s7 = inlined_call_operand.vmem [shape: bf16[2,32,32], index: 7, kind: input, shape index: {}]   ;;  %s4784_s8 = inlined_call_operand.hbm [shape: f32[2,1,32], index: 8, kind: input, shape index: {}]   ;;  %s4785_s9 = inlined_call_operand.hbm [shape: f32[2,1,32], index: 9, kind: input, shape index: {}]   ;;  %s4786_s10 = inlined_call_operand.hbm [shape: f32[2,1,32], index: 10, kind: input, shape index: {}]   ;;  %s4787_s11 = inlined_call_operand.vmem [shape: bf16[2,4,8,32], index: 11, kind: input, shape index: {}]   ;;  %s4788_s12 = inlined_call_operand.vmem [shape: f32[2,1,32], index: 12, kind: input, shape index: {}]   ;;  %s4789_s13 = inlined_call_operand.vmem [shape: f32[2,1,32], index: 13, kind: input, shape index: {}]   ;;  %s4790_s14 = inlined_call_operand.vmem [shape: f32[2,1,32], index: 14, kind: input, shape index: {}]   ;;  %s4791_s15 = inlined_call_operand.vmem [shape: bf16[2,32,128], index: 15, kind: input, shape index: {}]   ;;  %s4792_s16 = inlined_call_operand.vmem [shape: f32[2,1,128], index: 16, kind: input, shape index: {}]   ;;  %s4793_s17 = inlined_call_operand.vmem [shape: bf16[2,128,32], index: 17, kind: input, shape index: {}]   ;;  %s4794_s18 = inlined_call_operand.vmem [shape: f32[2,1,32], index: 18, kind: input, shape index: {}]   ;;  %s4795_s19 = inlined_call_operand.vmem [shape: f32[1,32], index: 19, kind: input, shape index: {}]   ;;  %s4796_s20 = inlined_call_operand.vmem [shape: f32[1,32], index: 20, kind: input, shape index: {}]   ;;  %s4797_s21 = inlined_call_operand.vmem [shape: bf16[32,16], index: 21, kind: input, shape index: {}]   ;;  %s4798_s22 = inlined_call_operand.hbm [shape: f32[2,8,32], index: 22, kind: output, shape index: {0}]   ;;  %s4799_s23 = inlined_call_operand.hbm [shape: f32[2,1,16], index: 23, kind: output, shape index: {1}]  }
   0x1   :  { %4830 = sst [smem:[#allocation39_spill]] %s4776_s0 }
   0x2   :  { %4831 = sst [smem:[#allocation40_spill]] %s4777_s1  ;;  %s4853_s24 = sld [smem:[#allocation39_spill]] }
   0x3   :  { %4832 = sst [smem:[#allocation41_spill]] %s4778_s2 }
   0x4   :  { %4833 = sst [smem:[#allocation42_spill]] %s4779_s3 }
   0x5   :  { %4834 = sst [smem:[#allocation43_spill]] %s4780_s4 }
   0x6   :  { %4835 = sst [smem:[#allocation44_spill]] %s4781_s5 }
   0x7   :  { %4836 = sst [smem:[#allocation45_spill]] %s4782_s6 }
   0x8   :  { %4837 = sst [smem:[#allocation46_spill]] %s4783_s7 }
   0x9   :  { %4838 = sst [smem:[#allocation47_spill]] %s4784_s8 }
   0xa   :  { %4839 = sst [smem:[#allocation48_spill]] %s4785_s9 }
   0xb   :  { %4840 = sst [smem:[#allocation49_spill]] %s4786_s10 }
   0xc   :  { %4841 = sst [smem:[#allocation50_spill]] %s4787_s11 }
   0xd   :  { %4842 = sst [smem:[#allocation51_spill]] %s4788_s12 }
   0xe   :  { %4843 = sst [smem:[#allocation52_spill]] %s4790_s14 }
   0xf   :  { %4844 = sst [smem:[#allocation53_spill]] %s4791_s15 }
  0x10   :  { %4845 = sst [smem:[#allocation54_spill]] %s4792_s16 }
  0x11   :  { %4846 = sst [smem:[#allocation55_spill]] %s4793_s17  ;;  %s3642_s17 = scalar_lea.hbm %s4853_s24, 16 }
  0x12   :  { %4847 = sst [smem:[#allocation56_spill]] %s4794_s18  ;;  %p3643_p0 = scmp.ne.s32.totalorder %s4853_s24, %s3642_s17 }
  0x13   :  { %4848 = sst [smem:[#allocation57_spill]] %s4795_s19  ;;  %p3646_p1 = scmp.lt.u32.totalorder %s3642_s17, %s4853_s24 }
  0x14   :  { %4849 = sst [smem:[#allocation58_spill]] %s4796_s20 }
  0x15   :  { %4850 = sst [smem:[#allocation59_spill]] %s4797_s21  ;;  %p3648_p2 = pnand %p3646_p1, %p3643_p0 }
  0x16   :  { %4851 = sst [smem:[#allocation60_spill]] %s4798_s22 }
  0x17   :  { %4852 = sst [smem:[#allocation61_spill]] %s4799_s23 }
  0x18   :  { %3651 = shalt.err (!%p3648_p2)  }
  0x19   :  { %s3968_s2 = smov [#allocation4]  }
  0x1a   :  { %30 = dma.hbm_to_smem %s4853_s24, 16, %s3968_s2, [#allocation3] }
  0x1b   :  { %3902 = dma.done.wait [#allocation3], 16 }
  0x1c   :  { %3903 = vsyncadd [#allocation3], 4294967280 }
  0x1d   :  { %32 = sfence }
  0x1e   :  { %33 = vsyncpa [#allocation6], 0 }
  0x1f   :  { %35 = vsyncpa [#allocation6 + $0x1], 0 }
  0x20   :  { %36 = vsyncpa [#allocation9], 0 }
  0x21   :  { %38 = vsyncpa [#allocation9 + $0x1], 0 }
  0x22   :  { %39 = vsyncpa [#allocation12], 0 }
  0x23   :  { %41 = vsyncpa [#allocation12 + $0x1], 0 }
  0x24   :  { %42 = vsyncpa [#allocation7], 0 }
  0x25   :  { %44 = vsyncpa [#allocation7 + $0x1], 0 }
  0x26   :  { %45 = vsyncpa [#allocation16], 0 }
  0x27   :  { %47 = vsyncpa [#allocation16 + $0x1], 0  ;;  %s4117_s17 = smov 0   ;;  %s4119_s7 = smov 0  }
  0x28   :  { %s4121_s28 = smov 0   ;;  %s4123_s29 = smov 0  }
  0x29   :  { %s4125_s3 = smov 0   ;;  %s4127_s0 = smov 0  }
  0x2a   :  { %s4129_s4 = smov 0   ;;  %s4131_s30 = smov 0  }
  0x2b   :  { %s4133_s24 = smov 0   ;;  %s4135_s25 = smov 0  }
  0x2c   :  { %s4137_s5 = smov 0  }
  0x2d LB: > { %4854 = sst [smem:[#allocation23_spill]] %s3926_s17  ;;  %s4171_s1 = sadd.s32 4294967295, %s3966_s5   ;;  %s3966_s5 = sphi %s4137_s5, %s53_s5   ;;  %s3962_s25 = sphi %s4135_s25, %s4937_s25   ;;  %s3958_s24 = sphi %s4133_s24, %s4936_s24   ;;  %s3954_s30 = sphi %s4131_s30, %s4935_s30   ;;  %s3950_s4 = sphi %s4129_s4, %s4934_s4   ;;  %s3946_s0 = sphi %s4127_s0, %s4933_s0   ;;  %s3942_s3 = sphi %s4125_s3, %s4932_s3   ;;  %s3938_s29 = sphi %s4123_s29, %s4931_s29   ;;  %s3934_s28 = sphi %s4121_s28, %s4930_s28   ;;  %s3930_s7 = sphi %s4119_s7, %s4929_s7   ;;  %s3926_s17 = sphi %s4117_s17, %s4928_s17  }
  0x2e   : > { %4855 = sst [smem:[#allocation24_spill]] %s3930_s7  ;;  %s3046_s26 = sadd.s32 4294967294, %s3966_s5  }
  0x2f   : > { %4856 = sst [smem:[#allocation25_spill]] %s3934_s28  ;;  %s62_s2 = sadd.s32 1, %s3958_s24 }
  0x30   : > { %4857 = sst [smem:[#allocation26_spill]] %s3942_s3  ;;  %s65_s6 = sadd.s32 1, %s3962_s25 }
  0x31   : > { %4858 = sst [smem:[#allocation27_spill]] %s3946_s0  ;;  %p63_p3 = scmp.ge.s32.totalorder %s62_s2, 2 }
  0x32   : > { %4859 = sst [smem:[#allocation28_spill]] %s3954_s30  ;;  %s119_s27 = sadd.s32 1, %s3946_s0 }
  0x33   : > { %4860 = sst [smem:[#allocation29_spill]] %s3958_s24  ;;  %p126_p4 = scmp.ne.s32.totalorder %s3946_s0, %s3942_s3 }
  0x34   : > { %4861 = sst [smem:[#allocation30_spill]] %s3962_s25  ;;  %p127_p5 = scmp.eq.s32.totalorder %s3966_s5, 0 }
  0x35   : > { %4862 = sst [smem:[#allocation31_spill]] %s3966_s5  ;;  %s4939_s2 = smov (%p63_p3, %s62_s2), 0 }
  0x36   : > { %4863 = sst [smem:[#allocation32_spill]] %s4939_s2  ;;  %s4941_s6 = smov (!%p63_p3, %s65_s6), %s3962_s25 }
  0x37   : > { %s116_s23 = ssub.s32 %s3958_s24, %s4939_s2  ;;  %p4185_p6 = por %p127_p5, %p126_p4 }
  0x38   : > { %p67_p7 = scmp.ge.s32.totalorder %s4941_s6, 2  ;;  %p117_p8 = scmp.eq.s32.totalorder %s116_s23, 0 }
  0x39   : > { %p132_p9 = scmp.ne.s32.totalorder %s3942_s3, %s3938_s29  ;;  %p133_p10 = scmp.eq.s32.totalorder %s4171_s1, 0 }
  0x3a   : > { %s4943_s6 = smov (%p67_p7, %s4941_s6), 0  ;;  %s598_s21 = sadd.s32 1, %s3934_s28 }
  0x3b   : > { %4865 = sst [smem:[#allocation33_spill]] %s4943_s6  ;;  %p4196_p11 = por %p133_p10, %p132_p9 }
  0x3c   : > { %s4194_s20 = scalar_select %p117_p8, %s3946_s0, %s119_s27  }
  0x3d   : > { %s4867_s2 = scalar_select %p4196_p11, 1, 0 }
  0x3e   : > { %4866 = sst [smem:[#allocation34_spill]] %s4194_s20  ;;  %s595_s19 = ssub.s32 %s3962_s25, %s4943_s6 }
  0x3f   : > { %p596_p12 = scmp.eq.s32.totalorder %s595_s19, 0  ;;  %p608_p13 = scmp.ne.s32.totalorder %s3934_s28, %s3930_s7 }
  0x40   : > { %p609_p0 = scmp.eq.s32.totalorder %s4171_s1, 3  ;;  %p614_p2 = scmp.ne.s32.totalorder %s3930_s7, %s3926_s17 }
  0x41   : > { %s4207_s23 = scalar_select %p596_p12, %s3934_s28, %s598_s21  }
  0x42   : > { %p4209_p1 = por %p609_p0, %p608_p13  ;;  %p615_p3 = scmp.eq.s32.totalorder %s3046_s26, 3 }
  0x43   : > { %4868 = sst [smem:[#allocation35_spill]] %s4207_s23  ;;  %p3516_p4 = scmp.lt.s32.totalorder %s3966_s5, 4 }
  0x44   : > { %s4869_s29 = scalar_select %p4209_p1, 1, 0 }
  0x45   : > { %s4217_s27 = sand.u32 1, %s3946_s0   ;;  %p4219_p5 = por %p615_p3, %p614_p2 }
  0x46   : > { %4870 = sst [smem:[#allocation36_spill]] %s4869_s29  ;;  %s4224_s6 = sshll.u32 %s3958_s24, 4 }
  0x47   : > { %s4871_s19 = scalar_select %p4219_p5, 1, 0 }
  0x48   : > { %p4228_p7 = pnand %p3516_p4, %p4185_p6  ;;  %s4816_s25 = sand.u32 1, %s3966_s5  }
  0x49   : > { %4872 = sst [smem:[#allocation37_spill]] %s4871_s19  ;;  %s4874_s23 = sld [smem:[#allocation43_spill]] }
  0x4a   : > { %s4873_s21 = scalar_select %p4228_p7, 1, 0 }
  0x4b   : > { %s700_s28 = scalar_lea.vmem [#allocation8], %s4217_s27  ;;  %s4246_s22 = scalar_lea.sflag [#allocation9], %s4816_s25 }
  0x4c   : > { %s707_s24 = sshll.u32 %s700_s28, 4  ;;  %p4252_p10 = pneg %p4228_p7  ;;  %s4241_s24 = int_to_ptr.vmem [resolvable:$true] %s707_s24 }
  0x4f   : > { %s4237_s0 = scalar_lea.hbm %s4874_s23, %s4224_s6  ;;  %s3657_s17 = scalar_lea.hbm %s4874_s23, 32 }
  0x50   : > { %s3652_s19 = scalar_lea.hbm %s4237_s0, 16  ;;  %p3658_p0 = scmp.lt.u32.totalorder %s4237_s0, %s4874_s23 }
  0x51   : > { %p3653_p9 = scmp.ne.s32.totalorder %s4237_s0, %s3652_s19  ;;  %p3659_p2 = scmp.lt.u32.totalorder %s3657_s17, %s3652_s19 }
  0x52   : > { %p3661_p4 = scmp.lt.u32.totalorder %s3652_s19, %s4237_s0 }
  0x53   : > { %p3655_p12 = pnand %p4252_p10, %p3653_p9  ;;  %p3660_p3 = por %p3659_p2, %p3658_p0 }
  0x55   : > { %p3656_p13 = pneg %p3655_p12  ;;  %p3662_p8 = por %p3661_p4, %p3660_p3 }
  0x57   : > { %p3663_p6 = pnand %p3662_p8, %p3656_p13 }
  0x59   : > { %3666 = shalt.err (!%p3663_p6)
}
  0x5a   : > { %s3667_s25 = scalar_lea.vmem %s4241_s24, 16  ;;  %s3969_s26 = smov [#allocation8]  }
  0x5b   : > { %p3668_p9 = scmp.ne.s32.totalorder %s4241_s24, %s3667_s25  ;;  %s3672_s28 = sshll.u32 %s3969_s26, 4  ;;  %s3673_s28 = int_to_ptr.vmem [resolvable:$false] %s3672_s28 }
  0x5c   : > { %s3674_s18 = scalar_lea.vmem %s3673_s28, 32  ;;  %p3675_p1 = scmp.lt.s32.totalorder %s4241_s24, %s3673_s28 }
  0x5d   : > { %p3670_p12 = pnand %p3668_p9, %p4252_p10  ;;  %p3676_p11 = scmp.lt.s32.totalorder %s3674_s18, %s3667_s25 }
  0x5f   : > { %p3671_p5 = pneg %p3670_p12  ;;  %p3677_p0 = por %p3676_p11, %p3675_p1 }
  0x61   : > { %p3678_p2 = pnand %p3677_p0, %p3671_p5 }
  0x63   : > { %3681 = shalt.err (!%p3678_p2)
}
  0x64   : > { %3499 = dma.hbm_to_vmem [thread:$0]  (!%p4228_p7), %s4237_s0, 16, %s4241_s24, %s4246_s22  }
  0x65   : > { %p4876_p8 = scmp.lt.s32.totalorder %s3966_s5, 5  ;;  %p4877_p6 = scmp.ge.s32.totalorder %s3966_s5, 1 }
  0x66   : > { %s4879_s9 = sld [smem:[#allocation48_spill]]  ;;  %s758_s26 = scalar_lea.vmem [#allocation11], %s4217_s27 }
  0x67   : > { %p4280_p13 = pnand %p4877_p6, %p4876_p8  ;;  %s765_s28 = sshll.u32 %s758_s26, 4  ;;  %s766_s28 = int_to_ptr.vmem [resolvable:$true] %s765_s28 }
  0x68   : > { %s4880_s18 = sand.u32 1, %s3966_s5  }
  0x69   : > { %s4878_s17 = scalar_select %p4280_p13, 1, 0 }
  0x6a   : > { %s4293_s0 = scalar_lea.sflag [#allocation12], %s4880_s18 }
  0x6c   : > { %s4288_s19 = scalar_lea.hbm %s4879_s9, %s4224_s6  ;;  %s3687_s25 = scalar_lea.hbm %s4879_s9, 32 }
  0x6d   : > { %s3682_s24 = scalar_lea.hbm %s4288_s19, 16  ;;  %p3688_p3 = scmp.lt.u32.totalorder %s4288_s19, %s4879_s9 }
  0x6e   : > { %p3683_p11 = scmp.ne.s32.totalorder %s4288_s19, %s3682_s24  ;;  %p3689_p4 = scmp.lt.u32.totalorder %s3687_s25, %s3682_s24 }
  0x6f   : > { %p3691_p12 = scmp.lt.u32.totalorder %s3682_s24, %s4288_s19 }
  0x70   : > { %p3685_p1 = pnand %p3683_p11, %p4252_p10  ;;  %p3690_p9 = por %p3689_p4, %p3688_p3 }
  0x72   : > { %p3686_p5 = pneg %p3685_p1  ;;  %p3692_p0 = por %p3691_p12, %p3690_p9 }
  0x74   : > { %p3693_p2 = pnand %p3692_p0, %p3686_p5 }
  0x76   : > { %3696 = shalt.err (!%p3693_p2)
}
  0x77   : > { %s3697_s26 = scalar_lea.vmem %s766_s28, 16  ;;  %s3970_s18 = smov [#allocation11]  }
  0x78   : > { %p3698_p8 = scmp.ne.s32.totalorder %s766_s28, %s3697_s26  ;;  %s3702_s5 = sshll.u32 %s3970_s18, 4  ;;  %s3703_s5 = int_to_ptr.vmem [resolvable:$false] %s3702_s5 }
  0x79   : > { %s3704_s16 = scalar_lea.vmem %s3703_s5, 32  ;;  %p3705_p1 = scmp.lt.s32.totalorder %s766_s28, %s3703_s5 }
  0x7a   : > { %p3700_p6 = pnand %p3698_p8, %p4252_p10  ;;  %p3706_p13 = scmp.lt.s32.totalorder %s3704_s16, %s3697_s26 }
  0x7c   : > { %p3701_p11 = pneg %p3700_p6  ;;  %p3707_p7 = por %p3706_p13, %p3705_p1 }
  0x7e   : > { %p3708_p3 = pnand %p3707_p7, %p3701_p11 }
  0x80   : > { %3711 = shalt.err (!%p3708_p3)
}
  0x81   : > { %p4881_p4 = scmp.ne.s32.totalorder %s4873_s21, 0  ;;  %s4882_s24 = sld [smem:[#allocation42_spill]] }
  0x82   : > { %s683_s5 = scalar_lea.vmem [#allocation5], %s4217_s27  ;;  %s681_s26 = scalar_lea.sflag [#allocation6], %s4217_s27 }
  0x83   : > { %3505 = dma.hbm_to_vmem [thread:$0]  (!%p4881_p4), %s4288_s19, 16, %s766_s28, %s4293_s0  }
  0x84   : > { %s690_s29 = sshll.u32 %s683_s5, 4  ;;  %s691_s29 = int_to_ptr.vmem [resolvable:$true] %s690_s29 }
  0x87   : > { %s4883_s9 = smov %s4882_s24  ;;  %s4317_s25 = scalar_lea.hbm %s4882_s24, %s4224_s6 }
  0x88   : > { %s3712_s18 = scalar_lea.hbm %s4317_s25, 16  ;;  %s3717_s28 = scalar_lea.hbm %s4883_s9, 32 }
  0x89   : > { %p3713_p7 = scmp.ne.s32.totalorder %s4317_s25, %s3712_s18  ;;  %p3718_p9 = scmp.lt.u32.totalorder %s4317_s25, %s4883_s9 }
  0x8a   : > { %p3719_p12 = scmp.lt.u32.totalorder %s3717_s28, %s3712_s18  ;;  %p3721_p2 = scmp.lt.u32.totalorder %s3712_s18, %s4317_s25 }
  0x8b   : > { %p3715_p13 = pnand %p3713_p7, %p4252_p10 }
  0x8c   : > { %p3720_p0 = por %p3719_p12, %p3718_p9 }
  0x8d   : > { %p3716_p5 = pneg %p3715_p13 }
  0x8e   : > { %p3722_p8 = por %p3721_p2, %p3720_p0 }
  0x90   : > { %p3723_p6 = pnand %p3722_p8, %p3716_p5 }
  0x92   : > { %3726 = shalt.err (!%p3723_p6)
}
  0x93   : > { %s3727_s24 = scalar_lea.vmem %s691_s29, 16  ;;  %s3971_s5 = smov [#allocation5]  }
  0x94   : > { %p3728_p11 = scmp.ne.s32.totalorder %s691_s29, %s3727_s24  ;;  %s3732_s14 = sshll.u32 %s3971_s5, 4  ;;  %s3733_s14 = int_to_ptr.vmem [resolvable:$false] %s3732_s14 }
  0x95   : > { %s3734_s16 = scalar_lea.vmem %s3733_s14, 32  ;;  %p3735_p7 = scmp.lt.s32.totalorder %s691_s29, %s3733_s14 }
  0x96   : > { %p3730_p1 = pnand %p3728_p11, %p4252_p10  ;;  %p3736_p13 = scmp.lt.s32.totalorder %s3734_s16, %s3727_s24 }
  0x98   : > { %p3731_p3 = pneg %p3730_p1  ;;  %p3737_p4 = por %p3736_p13, %p3735_p7 }
  0x9a   : > { %p3738_p9 = pnand %p3737_p4, %p3731_p3 }
  0x9c   : > { %3741 = shalt.err (!%p3738_p9)
}
  0x9d   : > { %p4884_p12 = scmp.ne.s32.totalorder %s4873_s21, 0  ;;  %s4885_s8 = sld [smem:[#allocation47_spill]] }
  0x9e   : > { %s741_s14 = scalar_lea.vmem [#allocation10], %s4217_s27 }
  0x9f   : > { %3496 = dma.hbm_to_vmem [thread:$0]  (!%p4884_p12), %s4317_s25, 16, %s691_s29, %s681_s26  }
  0xa0   : > { %s748_s15 = sshll.u32 %s741_s14, 4  ;;  %s749_s15 = int_to_ptr.vmem [resolvable:$true] %s748_s15 }
  0xa3   : > { %s4342_s28 = scalar_lea.hbm %s4885_s8, %s4224_s6  ;;  %s3747_s25 = scalar_lea.hbm %s4885_s8, 32 }
  0xa4   : > { %s3742_s23 = scalar_lea.hbm %s4342_s28, 16  ;;  %p3748_p2 = scmp.lt.u32.totalorder %s4342_s28, %s4885_s8 }
  0xa5   : > { %p3743_p4 = scmp.ne.s32.totalorder %s4342_s28, %s3742_s23  ;;  %p3749_p8 = scmp.lt.u32.totalorder %s3747_s25, %s3742_s23 }
  0xa6   : > { %p3751_p11 = scmp.lt.u32.totalorder %s3742_s23, %s4342_s28 }
  0xa7   : > { %p3745_p5 = pnand %p3743_p4, %p4252_p10  ;;  %p3750_p6 = por %p3749_p8, %p3748_p2 }
  0xa9   : > { %p3746_p0 = pneg %p3745_p5  ;;  %p3752_p1 = por %p3751_p11, %p3750_p6 }
  0xab   : > { %p3753_p3 = pnand %p3752_p1, %p3746_p0 }
  0xad   : > { %3756 = shalt.err (!%p3753_p3)
}
  0xae   : > { %s3757_s16 = scalar_lea.vmem %s749_s15, 16  ;;  %s3972_s18 = smov [#allocation10]  }
  0xaf   : > { %p3758_p7 = scmp.ne.s32.totalorder %s749_s15, %s3757_s16  ;;  %s3762_s19 = sshll.u32 %s3972_s18, 4  ;;  %s3763_s19 = int_to_ptr.vmem [resolvable:$false] %s3762_s19 }
  0xb0   : > { %s3764_s14 = scalar_lea.vmem %s3763_s19, 32  ;;  %p3765_p4 = scmp.lt.s32.totalorder %s749_s15, %s3763_s19 }
  0xb1   : > { %p3760_p13 = pnand %p3758_p7, %p4252_p10  ;;  %p3766_p5 = scmp.lt.s32.totalorder %s3764_s14, %s3757_s16 }
  0xb3   : > { %p3761_p9 = pneg %p3760_p13  ;;  %p3767_p12 = por %p3766_p5, %p3765_p4 }
  0xb5   : > { %p3768_p2 = pnand %p3767_p12, %p3761_p9 }
  0xb7   : > { %3771 = shalt.err (!%p3768_p2)
}
  0xb8   : > { %p4886_p8 = scmp.ne.s32.totalorder %s4873_s21, 0  ;;  %s4887_s10 = sld [smem:[#allocation49_spill]] }
  0xb9   : > { %s775_s25 = scalar_lea.vmem [#allocation13], %s4217_s27 }
  0xba   : > { %3502 = dma.hbm_to_vmem [thread:$0]  (!%p4886_p8), %s4342_s28, 16, %s749_s15, %s4246_s22  }
  0xbb   : > { %s782_s29 = sshll.u32 %s775_s25, 4  ;;  %s783_s29 = int_to_ptr.vmem [resolvable:$true] %s782_s29 }
  0xbe   : > { %s4367_s5 = scalar_lea.hbm %s4887_s10, %s4224_s6  ;;  %s3777_s22 = scalar_lea.hbm %s4887_s10, 32 }
  0xbf   : > { %s3772_s26 = scalar_lea.hbm %s4367_s5, 16  ;;  %p3778_p11 = scmp.lt.u32.totalorder %s4367_s5, %s4887_s10 }
  0xc0   : > { %p3773_p12 = scmp.ne.s32.totalorder %s4367_s5, %s3772_s26  ;;  %p3779_p1 = scmp.lt.u32.totalorder %s3777_s22, %s3772_s26 }
  0xc1   : > { %p3781_p7 = scmp.lt.u32.totalorder %s3772_s26, %s4367_s5 }
  0xc2   : > { %p3775_p0 = pnand %p3773_p12, %p4252_p10  ;;  %p3780_p3 = por %p3779_p1, %p3778_p11 }
  0xc4   : > { %p3776_p6 = pneg %p3775_p0  ;;  %p3782_p13 = por %p3781_p7, %p3780_p3 }
  0xc6   : > { %p3783_p9 = pnand %p3782_p13, %p3776_p6 }
  0xc8   : > { %3786 = shalt.err (!%p3783_p9)
}
  0xc9   : > { %s3787_s6 = scalar_lea.vmem %s783_s29, 16  ;;  %s3973_s27 = smov [#allocation13]  }
  0xca   : > { %p3788_p4 = scmp.ne.s32.totalorder %s783_s29, %s3787_s6  ;;  %s3792_s19 = sshll.u32 %s3973_s27, 4  ;;  %s3793_s19 = int_to_ptr.vmem [resolvable:$false] %s3792_s19 }
  0xcb   : > { %s3794_s14 = scalar_lea.vmem %s3793_s19, 32  ;;  %p3795_p12 = scmp.lt.s32.totalorder %s783_s29, %s3793_s19 }
  0xcc   : > { %p3790_p5 = pnand %p3788_p4, %p4252_p10  ;;  %p3796_p0 = scmp.lt.s32.totalorder %s3794_s14, %s3787_s6 }
  0xce   : > { %p3791_p2 = pneg %p3790_p5  ;;  %p3797_p8 = por %p3796_p0, %p3795_p12 }
  0xd0   : > { %p3798_p1 = pnand %p3797_p8, %p3791_p2 }
  0xd2   : > { %3801 = shalt.err (!%p3798_p1)
}
  0xd3   : > { %p4888_p11 = scmp.ne.s32.totalorder %s4873_s21, 0  ;;  %p4889_p6 = scmp.ne.s32.totalorder %s4878_s17, 0 }
  0xd5   : > { %3508 = dma.hbm_to_vmem [thread:$0]  (!%p4888_p11), %s4367_s5, 16, %s783_s29, %s4293_s0  }
  0xd6   : > { %845 = sbr.rel (%p4889_p6) target bundleno = 3294 (0xcde), region = 104 }
  0xdd   : > { %s4391_s20 = sand.u32 1, %s3942_s3   ;;  %p4890_p10 = scmp.ne.s32.totalorder %s4867_s2, 0 }
  0xde   : > { %s848_s23 = scalar_lea.sflag [#allocation6], %s4391_s20 }
  0xdf   : > { %3905 = dma.done.wait (%p4890_p10), %s848_s23, 16  }
  0xe0   : > { %3907 = vsyncadd (%p4890_p10), %s848_s23, 4294967280  ;;  %s855_s21 = sand.u32 1, %s4171_s1  }
  0xe1   : > { %s856_s0 = scalar_lea.sflag [#allocation9], %s855_s21 }
  0xe2   : > { %3909 = dma.done.wait (%p4890_p10), %s856_s0, 32  }
  0xe3   : > { %3911 = vsyncadd (%p4890_p10), %s856_s0, 4294967264  ;;  %s872_s25 = scalar_lea.sflag [#allocation12], %s855_s21 }
  0xe4   : > { %3913 = dma.done.wait (%p4890_p10), %s872_s25, 32  }
  0xe5   : > { %3915 = vsyncadd (%p4890_p10), %s872_s25, 4294967264  ;;  %s4412_s1 = sand.u32 1, %s3930_s7   ;;  %p1011_p8 = scmp.lt.s32.totalorder %s3954_s30, 1 }
  0xe6   : > { %s3055_s26 = sshll.u32 %s4412_s1, 3  ;;  %p1015_p3 = scmp.lt.s32.totalorder %s3950_s4, 1 }
  0xe7   : > { %s1012_s16 = scalar_select %p1011_p8, %s3954_s30, 1 }
  0xe8   : > { %s4419_s18 = scalar_select %p1015_p3, %s3950_s4, 1 }
  0xe9   : > { %s3056_s2 = sshll.u32 %s1012_s16, 3  ;;  %s4891_s15 = sld [smem:[#allocation40_spill]] }
  0xea   : > { %s3110_s27 = sshll.u32 %s4419_s18, 4  ;;  %s4892_s23 = sld [smem:[#allocation44_spill]] }
  0xeb   : > { %s4893_s29 = sld [smem:[#allocation45_spill]]  ;;  %s4894_s8 = sld [smem:[#allocation46_spill]] }
  0xec   : > { %s4895_s11 = sld [smem:[#allocation50_spill]]  ;;  %s4898_s10 = sld [smem:[#allocation52_spill]] }
  0xed   : > { %s4899_s17 = sld [smem:[#allocation53_spill]]  ;;  %s4901_s19 = sld [smem:[#allocation55_spill]] }
  0xee   : > { %s4902_s0 = sld [smem:[#allocation56_spill]]  ;;  %s4477_s25 = scalar_lea.vmem [#allocation14], %s3055_s26 }
  0xef   : > { %s1014_s6 = scalar_lea.vmem %s4891_s15, %s3056_s2  ;;  %s1010_s24 = scalar_lea.vmem [#allocation15], %s4412_s1 }
  0xf0   : > { %s4428_s21 = scalar_lea.vmem %s4892_s23, %s3110_s27  ;;  %p3069_p7 = scmp.ne.s32.totalorder %s3950_s4, 0 }
  0xf1   : > { %s4433_s5 = scalar_lea.vmem %s4893_s29, %s3110_s27  ;;  %s4438_s16 = scalar_lea.vmem %s4894_s8, %s3110_s27  ;;  %v1064_v0 = vld [vmem:[%s1014_s6] sm:$0xff] (!%p3069_p7)  ;;  %vm1067_vm0 = vcmask (!%p3069_p7), 261120  }
  0xf2   : > { %s4443_s2 = scalar_lea.vmem %s4895_s11, %s3110_s27  ;;  %s1043_s3 = scalar_lea.vmem %s4898_s10, %s4419_s18 }
  0xf3   : > { %4896 = sst [smem:[#allocation38_spill]] %s4443_s2  ;;  %s4460_s7 = scalar_lea.vmem %s4899_s17, %s3110_s27 }
  0xf4   : > { %s4900_s11 = sld [smem:[#allocation54_spill]]  ;;  %s3115_s2 = sshll.u32 %s4419_s18, 6 }
  0xf5   : > { %s4470_s12 = scalar_lea.vmem %s4901_s19, %s3115_s2  ;;  %s1059_s29 = scalar_lea.vmem %s4902_s0, %s4419_s18 }
  0xf6   : > { %s882_s10 = scalar_lea.vmem [#allocation13], %s4391_s20  ;;  %1063 = sbr.rel (%p3069_p7) target bundleno = 257 (0x101), region = 128 }
  0xf7   : > { %s4903_s8 = sld [smem:[#allocation41_spill]] (!%p3069_p7) }
  0xfa   : > { %s1051_s30 = scalar_lea.vmem %s4900_s11, %s4419_s18 }
  0xfd   : > { %v1065_v1 = vld [vmem:[%s4903_s8] sm:$0xff] }
  0xfe   : > { %v1066_v2 = vadd.f32 %v1065_v1, %v1064_v0 }
 0x100   : > { %1068 = vst.msk [vmem:[#allocation2] sm:$0xff] %vm1067_vm0, %v1066_v2 }
 0x101 PF: > { %vm1076_vm1 = vcmask 261120   ;;  %v3117_v10 = vld [vmem:[%s4428_s21] sm:$0xff]   ;;  %v3974_v11 = vmov 0.0|0.0   ;;  %vm3975_vm2 = vmmov 0   ;;  %v3976_v12 = vmov 0.0   ;;  %v3196_v13 = vld [vmem:[%s4428_s21 + $0x8] sm:$0xff]   ;;  %s4911_s14 = scalar_lea.vmem %s4789_s13, %s4419_s18 }
 0x102   : > { %3425 = vmatprep.subr.bf16.mxu0 %v3974_v11  ;;  %3283 = vmatprep.mubr.msk.f32.mxu0 %vm3975_vm2, %v3976_v12  ;;  %s4904_s26 = scalar_lea.vmem [#allocation5], %s4391_s20  ;;  %s4905_s6 = scalar_lea.vmem [#allocation8], %s4391_s20  ;;  %v3125_v23 = vld [vmem:[%s4433_s5] sm:$0xff]   ;;  %v3197_v24 = vld [vmem:[%s4433_s5 + $0x8] sm:$0xff]   ;;  %vm1390_vm3 = vcmask 64512   ;;  %v1070_v46 = vlaneseq }
 0x103   : > { %3427 = vmatpush3.bf16.msra.mxu0 %v3117_v10  ;;  %3313 = vmatprep.subr.mxu1 %v3976_v12  ;;  %v3070_v18 = vld [vmem:[%s4904_s26] ss:$0 sm:$0xff]  ;;  %v3198_v26 = vld [vmem:[%s4438_s16 + $0x8] sm:$0xff]   ;;  %s4906_s5 = scalar_lea.vmem [#allocation10], %s4391_s20  ;;  %s3977_s21 = smov 112  }
 0x104   : > { %3428 = vmatprep.subr.bf16.mxu0 %v3974_v11  ;;  %3315 = vmatprep.mubr.msk.f32.mxu1 %vm3975_vm2, %v3976_v12  ;;  %v3071_v20 = vld [vmem:[%s4905_s6] ss:$0 sm:$0xff]  ;;  %s3978_s2 = smov 120   ;;  %s3979_s19 = smov 104   ;;  %v4557_v47 = vshrl.u32 %v1070_v46, 7  ;;  %v1073_v48 = vand.u32 127, %v1070_v46 }
 0x105   : > { %v3133_v25 = vld [vmem:[%s4438_s16] sm:$0xff]   ;;  %s4907_s16 = scalar_lea.vmem [#allocation11], %s4391_s20  ;;  %s4908_s20 = sld [smem:[#allocation38_spill]] }
 0x106   : > { %v3072_v27 = vld [vmem:[%s4906_s5] ss:$0 sm:$0xff]  ;;  %vm1074_vm4 = vcmp.gt.s32.totalorder %v1073_v48, %v4557_v47  ;;  %s4909_s9 = sld [smem:[#allocation51_spill]]  ;;  %p3101_p13 = scmp.ne.s32.totalorder %s3950_s4, 1 }
 0x107   : > { %v4484_v3 = vld [vmem:[#allocation2] sm:$0xff]  ;;  %3430 = vmatpush3.bf16.msra.mxu0 %v3196_v13  ;;  %v1075_v49 = vsel %vm1074_vm4, -1e+30, %v3976_v12  ;;  %s4916_s6 = sld [smem:[#allocation59_spill]] (!%p3101_p13)  ;;  %vm3981_vm5 = vmmov (!%p3101_p13), 0   ;;  %s4918_s17 = sld [smem:[#allocation58_spill]] (!%p3101_p13) }
 0x108   : > { %v1077_v4 = vsel %vm1076_vm1, %v4484_v3, 0.0  ;;  %3431 = vmatprep.subr.bf16.mxu0 %v3974_v11  ;;  %v3074_v32 = vld [vmem:[%s4907_s16] ss:$0 sm:$0xff]  ;;  %vm2703_vm7 = vcmask (!%p3101_p13), 122880  }
 0x109   : > { %1078 = vadd.xlane.f32.xlu0 %v1077_v4  ;;  %v3076_v41 = vld [vmem:[%s882_s10] ss:$0 sm:$0xff] }
 0x10c   : > { %s4910_s22 = scalar_lea.vmem %s4909_s9, %s4419_s18 }
 0x196   : > { %v1079_v5 = vpop.xlane.xlu0 %1078 }
 0x197   : > { %v1081_v6 = vmul.f32 0.03125, %v1079_v5 }
 0x199   : > { %v1082_v7 = vsub.f32 %v4484_v3, %v1081_v6 }
 0x19b   : > { %v1083_v8 = vmul.f32 %v1082_v7, %v1082_v7 }
 0x19d   : > { %v1084_v9 = vsel %vm1076_vm1, %v1083_v8, 0.0 }
 0x19e   : > { %1085 = vadd.xlane.f32.xlu0 %v1084_v9 }
 0x22b   : > { %v1086_v14 = vpop.xlane.xlu0 %1085 }
 0x22c   : > { %v1087_v15 = vmul.f32 0.03125, %v1086_v14 }
 0x22e   : > { %v1088_v16 = vadd.f32 1e-05, %v1087_v15 }
 0x230   : > { %3616 = vrsqrt.f32 %v1088_v16 }
 0x23a   : > { %v3617_v17 = vpop.eup %3616 }
 0x23b   : > { %v1090_v19 = vmul.f32 %v3617_v17, %v1082_v7 }
 0x23d   : > { %v1098_v21 = vmul.f32 %v3070_v18, %v1090_v19 }
 0x23f   : > { %v1106_v22 = vadd.f32 %v3071_v20, %v1098_v21 }
 0x241   : > { %3284 = vmatmul.mubr.msk.f32.vlgmr.msra.gmra.mrb[0].mxu0 %vm1076_vm1, %v1106_v22 }
 0x242   : > { %3433 = vmatpush3.bf16.msra.mxu0 %v3125_v23  ;;  %3294 = vmatprep.mubr.msk.f32.mxu0 %vm3975_vm2, %v3976_v12 }
 0x243   : > { %3434 = vmatprep.subr.bf16.mxu0 %v3974_v11 }
 0x246   : > { %3436 = vmatpush3.bf16.msra.mxu0 %v3197_v24 }
 0x247   : > { %3437 = vmatprep.subr.bf16.mxu0 %v3974_v11 }
 0x249   : > { %3295 = vmatmul.mubr.msk.f32.vlgmr.msra.gmra.mrb[2].mxu0 %vm1076_vm1, %v1106_v22 }
 0x24a   : > { %3439 = vmatpush3.bf16.msra.mxu0 %v3133_v25  ;;  %3305 = vmatprep.mubr.msk.f32.mxu0 %vm3975_vm2, %v3976_v12 }
 0x24b   : > { %3440 = vmatprep.subr.bf16.mxu0 %v3974_v11 }
 0x24e   : > { %3442 = vmatpush3.bf16.msra.mxu0 %v3198_v26 }
 0x24f   : > { %3308 = vmatprep.subr.mxu0 %v3976_v12 }
 0x251   : > { %3306 = vmatmul.mubr.msk.f32.vlgmr.msra.gmra.mrb[4].mxu0 %vm1076_vm1, %v1106_v22 }
 0x252   : > { %3310 = vmatprep.mubr.msk.f32.mxu0 %vm3975_vm2, %v3976_v12 }
 0x314   : > { %v1191_v28 = vpop.f32.mrb[0].mxu0 }
 0x315   : > { %v1192_v29 = vadd.f32 %v3072_v27, %v1191_v28  ;;  %v3285_v30 = vpop.f32.mrb[1].mxu0 }
 0x317   : > { %v1195_v31 = vmul.f32 0.35355338, %v1192_v29 }
 0x319   : > { %1369 = vrot.lane.b32.xlu1 %v1195_v31, %s3977_s21  ;;  %1367 = vrot.lane.b32.xlu0 %v1195_v31, %s3978_s2 }
 0x31c   : > { %v1277_v33 = vpop.f32.mrb[2].mxu0 }
 0x31d   : > { %v1278_v34 = vadd.f32 %v3074_v32, %v1277_v33  ;;  %v3296_v35 = vpop.f32.mrb[3].mxu0 }
 0x31f   : > { %1374 = vrot.lane.b32.xlu1 %v1278_v34, %s3978_s2  ;;  %3309 = vmatpush3.xpose.msk.msra.mxu0 %vm1390_vm3, %v1278_v34 }
 0x320   : > { %3318 = vmatprep.subr.mxu0 %v3976_v12 }
 0x322   : > { %3311 = vmatmul.mubr.msk.f32.vlgmr.msra.gmra.mrb[6].mxu0 %vm1390_vm3, %v1195_v31 }
 0x323   : > { %1376 = vrot.lane.b32.xlu1 %v1278_v34, %s3977_s21  ;;  %3320 = vmatprep.mubr.msk.f32.mxu0 %vm3975_vm2, %v3976_v12 }
 0x324   : > { %v1362_v36 = vpop.f32.mrb[4].mxu0 }
 0x325   : > { %v3307_v37 = vpop.f32.mrb[5].mxu0  ;;  %v4545_v43 = vadd.f32 %v3076_v41, %v1362_v36 }
 0x327   : > { %1378 = vrot.lane.b32.xlu1 %v1278_v34, %s3979_s19  ;;  %v3141_v34 = vld [vmem:[%s4908_s20] sm:$0xff]  }
 0x328   : > { %v3142_v36 = vunpack.c.l.bf16 %v3141_v34 }
 0x32b   : > { %1371 = vrot.lane.b32.xlu1 %v1195_v31, %s3979_s19 }
 0x38b   : > { %v1370_v38 = vpop.permute.xlu1 %1369  ;;  %v1368_v40 = vpop.permute.xlu0 %1367 }
 0x391   : > { %v1375_v39 = vpop.permute.xlu1 %1374 }
 0x392   : > { %3314 = vmatpush3.xpose.msk.msra.mxu1 %vm1390_vm3, %v1375_v39 }
 0x393   : > { %3323 = vmatprep.subr.mxu1 %v3976_v12 }
 0x395   : > { %3316 = vmatmul.mubr.msk.f32.vlgmr.msra.gmra.mrb[0].mxu1 %vm1390_vm3, %v1368_v40  ;;  %v1377_v42 = vpop.permute.xlu1 %1376 }
 0x396   : > { %3319 = vmatpush3.xpose.msk.msra.mxu0 %vm1390_vm3, %v1377_v42  ;;  %3325 = vmatprep.mubr.msk.f32.mxu1 %vm3975_vm2, %v3976_v12  ;;  %v3143_v42 = vunpack.c.h.bf16 %v3141_v34  ;;  %v3207_v34 = vld [vmem:[%s4470_s12 + $0x38] sm:$0xff]  }
 0x397   : > { %3328 = vmatprep.subr.mxu0 %v3976_v12 }
 0x399   : > { %v1379_v44 = vpop.permute.xlu1 %1378  ;;  %3321 = vmatmul.mubr.msk.f32.vlgmr.msra.gmra.mrb[8].mxu0 %vm1390_vm3, %v1370_v38 }
 0x39a   : > { %3324 = vmatpush3.xpose.msk.msra.mxu1 %vm1390_vm3, %v1379_v44  ;;  %3329 = vmatpush3.msra.mxu0 %v4545_v43 }
 0x39b   : > { %3330 = vmatprep.mubr.msk.f32.mxu0 %vm3975_vm2, %v3976_v12  ;;  %3338 = vmatprep.subr.mxu0 %v3976_v12 }
 0x39c   : > { %3333 = vmatprep.subr.mxu1 %v3976_v12 }
 0x39d   : > { %v1372_v45 = vpop.permute.xlu1 %1371 }
 0x39e   : > { %3326 = vmatmul.mubr.msk.f32.vlgmr.msra.gmra.mrb[2].mxu1 %vm1390_vm3, %v1372_v45 }
 0x39f   : > { %3335 = vmatprep.mubr.msk.f32.mxu1 %vm3975_vm2, %v3976_v12 }
 0x3f5   : > { %v1461_v50 = vpop.f32.mrb[6].mxu0 }
 0x3f6   : > { %v1462_v51 = vadd.f32 %v1461_v50, %v1075_v49  ;;  %v3312_v52 = vpop.f32.mrb[7].mxu0 }
 0x3f8   : > { %v1687_v53 = vsel %vm1390_vm3, %v1462_v51, -inf }
 0x3f9   : > { %1688 = vmax.xlane.f32.xlu1 %v1687_v53 }
 0x468   : > { %v1535_v54 = vpop.f32.mrb[0].mxu1 }
 0x469   : > { %v1536_v55 = vadd.f32 %v1535_v54, %v1075_v49  ;;  %v3317_v56 = vpop.f32.mrb[1].mxu1 }
 0x46b   : > { %v1690_v57 = vsel %vm1390_vm3, %v1536_v55, -inf }
 0x46c   : > { %1691 = vmax.xlane.f32.xlu0 %v1690_v57  ;;  %v1609_v58 = vpop.f32.mrb[8].mxu0 }
 0x46d   : > { %v1610_v59 = vadd.f32 %v1609_v58, %v1075_v49  ;;  %v3322_v60 = vpop.f32.mrb[9].mxu0 }
 0x46f   : > { %v1693_v61 = vsel %vm1390_vm3, %v1610_v59, -inf }
 0x470   : > { %1694 = vmax.xlane.f32.xlu1 %v1693_v61 }
 0x471   : > { %v1683_v62 = vpop.f32.mrb[2].mxu1 }
 0x472   : > { %v1684_v63 = vadd.f32 %v1683_v62, %v1075_v49  ;;  %v3327_v0 = vpop.f32.mrb[3].mxu1 }
 0x474   : > { %v1696_v1 = vsel %vm1390_vm3, %v1684_v63, -inf }
 0x475   : > { %1697 = vmax.xlane.f32.xlu1 %v1696_v1 }
 0x486   : > { %v1689_v2 = vpop.xlane.xlu1 %1688 }
 0x487   : > { %v1699_v4 = vsub.f32 %v1462_v51, %v1689_v2 }
 0x489   : > { %v1703_v5 = vmul.f32 1.442695, %v1699_v4 }
 0x48b   : > { %3618 = vpow2.f32 %v1703_v5 }
 0x495   : > { %v3619_v6 = vpop.eup %3618 }
 0x496   : > { %v1711_v7 = vsel %vm1390_vm3, %v3619_v6, 0.0 }
 0x497   : > { %1712 = vadd.xlane.f32.xlu0 %v1711_v7 }
 0x4f9   : > { %v1692_v8 = vpop.xlane.xlu0 %1691 }
 0x4fa   : > { %v1700_v9 = vsub.f32 %v1536_v55, %v1692_v8 }
 0x4fc   : > { %v1705_v10 = vmul.f32 1.442695, %v1700_v9 }
 0x4fd   : > { %v1695_v13 = vpop.xlane.xlu1 %1694 }
 0x4fe   : > { %3620 = vpow2.f32 %v1705_v10  ;;  %v1701_v14 = vsub.f32 %v1610_v59, %v1695_v13 }
 0x500   : > { %v1707_v15 = vmul.f32 1.442695, %v1701_v14 }
 0x502   : > { %3622 = vpow2.f32 %v1707_v15  ;;  %v1698_v21 = vpop.xlane.xlu1 %1697 }
 0x503   : > { %v1702_v22 = vsub.f32 %v1684_v63, %v1698_v21 }
 0x505   : > { %v1709_v23 = vmul.f32 1.442695, %v1702_v22  ;;  %v3095_v22 = vld [vmem:[%s4911_s14] ss:$0 sm:$0xff] }
 0x508   : > { %v3621_v16 = vpop.eup %3620 }
 0x509   : > { %v1714_v17 = vsel %vm1390_vm3, %v3621_v16, 0.0 }
 0x50a   : > { %1715 = vadd.xlane.f32.xlu1 %v1714_v17  ;;  %v3149_v17 = vld [vmem:[%s4460_s7] sm:$0xff]  }
 0x50c   : > { %v3623_v18 = vpop.eup %3622 }
 0x50d   : > { %v1717_v19 = vsel %vm1390_vm3, %v3623_v18, 0.0 }
 0x50e   : > { %1718 = vadd.xlane.f32.xlu0 %v1717_v19 }
 0x51b   : > { %1384 = vrot.lane.b32.xlu1 %v4545_v43, %s3977_s21 }
 0x524   : > { %v1713_v20 = vpop.xlane.xlu0 %1712  ;;  %1381 = vrot.lane.b32.xlu0 %v4545_v43, %s3978_s2 }
 0x525   : > { %3624 = vrcp.f32 %v1713_v20 }
 0x526   : > { %3626 = vpow2.f32 %v1709_v23 }
 0x52f   : > { %v3625_v24 = vpop.eup %3624 }
 0x530   : > { %v1727_v25 = vmul.f32 %v3625_v24, %v3619_v6  ;;  %v3627_v26 = vpop.eup %3626  ;;  %v3094_v6 = vld [vmem:[%s4910_s22] ss:$0 sm:$0xff] }
 0x531   : > { %v1720_v27 = vsel %vm1390_vm3, %v3627_v26, 0.0  ;;  %v3096_v24 = vld [vmem:[%s1043_s3] ss:$0 sm:$0xff] }
 0x532   : > { %3331 = vmatmul.mubr.msk.f32.vlgmr.msra.gmra.mrb[10].mxu0 %vm1390_vm3, %v1727_v25 }
 0x533   : > { %3340 = vmatprep.mubr.msk.f32.mxu0 %vm3975_vm2, %v3976_v12 }
 0x53f   : > { %1721 = vadd.xlane.f32.xlu1 %v1720_v27  ;;  %v3157_v27 = vld [vmem:[%s4470_s12] sm:$0xff]  }
 0x550   : > { %1387 = vrot.lane.b32.xlu1 %v4545_v43, %s3979_s19  ;;  %v3199_v43 = vld [vmem:[%s4908_s20 + $0x8] sm:$0xff]   ;;  %s4917_s19 = sld [smem:[#allocation57_spill]] (!%p3101_p13) }
 0x551   : > { %v3146_v44 = vunpack.c.l.bf16 %v3199_v43  ;;  %v3147_v48 = vunpack.c.h.bf16 %v3199_v43 }
 0x597   : > { %v1716_v28 = vpop.xlane.xlu1 %1715 }
 0x598   : > { %3628 = vrcp.f32 %v1716_v28  ;;  %v3201_v28 = vld [vmem:[%s4470_s12 + $0x8] sm:$0xff]  }
 0x59b   : > { %v1719_v29 = vpop.xlane.xlu0 %1718  ;;  %v1385_v30 = vpop.permute.xlu1 %1384 }
 0x59c   : > { %3630 = vrcp.f32 %v1719_v29  ;;  %3339 = vmatpush3.msra.mxu0 %v1385_v30  ;;  %v3202_v29 = vld [vmem:[%s4470_s12 + $0x10] sm:$0xff]   ;;  %v3203_v30 = vld [vmem:[%s4470_s12 + $0x18] sm:$0xff]  }
 0x59d   : > { %3348 = vmatprep.subr.mxu0 %v3976_v12 }
 0x59f   : > { %v1382_v31 = vpop.permute.xlu0 %1381 }
 0x5a0   : > { %3334 = vmatpush3.msra.mxu1 %v1382_v31  ;;  %v3204_v31 = vld [vmem:[%s4470_s12 + $0x20] sm:$0xff]  }
 0x5a1   : > { %3343 = vmatprep.subr.mxu1 %v3976_v12 }
 0x5a2   : > { %v3629_v32 = vpop.eup %3628 }
 0x5a3   : > { %v1728_v33 = vmul.f32 %v3629_v32, %v3621_v16  ;;  %v3205_v32 = vld [vmem:[%s4470_s12 + $0x28] sm:$0xff]  }
 0x5a5   : > { %3336 = vmatmul.mubr.msk.f32.vlgmr.msra.gmra.mrb[4].mxu1 %vm1390_vm3, %v1728_v33  ;;  %v3206_v33 = vld [vmem:[%s4470_s12 + $0x30] sm:$0xff]  }
 0x5a6   : > { %v3631_v35 = vpop.eup %3630  ;;  %3345 = vmatprep.mubr.msk.f32.mxu1 %vm3975_vm2, %v3976_v12 }
 0x5a7   : > { %v1729_v37 = vmul.f32 %v3631_v35, %v3623_v18  ;;  %v3097_v35 = vld [vmem:[%s1051_s30] ss:$0 sm:$0xff]  ;;  %s4915_s30 = sld [smem:[#allocation28_spill]] (!%p3101_p13) }
 0x5a9   : > { %3341 = vmatmul.mubr.msk.f32.vlgmr.msra.gmra.mrb[12].mxu0 %vm1390_vm3, %v1729_v37 }
 0x5aa   : > { %3349 = vmatpush3.msra.mxu0 %v3142_v36  ;;  %3350 = vmatprep.mubr.msk.f32.mxu0 %vm3975_vm2, %v3976_v12 }
 0x5ab   : > { %3358 = vmatprep.subr.mxu0 %v3976_v12 }
 0x5ad   : > { %s2609_s21 = sld [smem:[#allocation4 + %s4915_s30]] (!%p3101_p13) }
 0x5cc   : > { %v1722_v38 = vpop.xlane.xlu1 %1721 }
 0x5cd   : > { %3632 = vrcp.f32 %v1722_v38 }
 0x5d0   : > { %v1388_v39 = vpop.permute.xlu1 %1387 }
 0x5d1   : > { %3344 = vmatpush3.msra.mxu1 %v1388_v39 }
 0x5d2   : > { %3353 = vmatprep.subr.mxu1 %v3976_v12 }
 0x5d7   : > { %v3633_v40 = vpop.eup %3632 }
 0x5d8   : > { %v1730_v41 = vmul.f32 %v3633_v40, %v3627_v26 }
 0x5da   : > { %3346 = vmatmul.mubr.msk.f32.vlgmr.msra.gmra.mrb[6].mxu1 %vm1390_vm3, %v1730_v41 }
 0x5db   : > { %3355 = vmatprep.mubr.msk.f32.mxu1 %vm3975_vm2, %v3976_v12  ;;  %3354 = vmatpush3.msra.mxu1 %v3143_v42 }
 0x5dc   : > { %3363 = vmatprep.subr.mxu1 %v3976_v12 }
 0x605   : > { %v1800_v45 = vpop.f32.mrb[10].mxu0 }
 0x606   : > { %v3332_v46 = vpop.f32.mrb[11].mxu0  ;;  %3351 = vmatmul.mubr.msk.f32.vlgmr.msra.gmra.mrb[14].mxu0 %vm1390_vm3, %v1800_v45 }
 0x607   : > { %3359 = vmatpush3.msra.mxu0 %v3146_v44  ;;  %3360 = vmatprep.mubr.msk.f32.mxu0 %vm3975_vm2, %v3976_v12 }
 0x608   : > { %3443 = vmatprep.subr.bf16.mxu0 %v3974_v11 }
 0x678   : > { %v1873_v49 = vpop.f32.mrb[4].mxu1 }
 0x679   : > { %v3337_v50 = vpop.f32.mrb[5].mxu1  ;;  %3356 = vmatmul.mubr.msk.f32.vlgmr.msra.gmra.mrb[8].mxu1 %vm1390_vm3, %v1873_v49 }
 0x67a   : > { %3364 = vmatpush3.msra.mxu1 %v3147_v48  ;;  %3365 = vmatprep.mubr.msk.f32.mxu1 %vm3975_vm2, %v3976_v12 }
 0x67b   : > { %3449 = vmatprep.subr.bf16.mxu1 %v3974_v11 }
 0x67c   : > { %v1946_v51 = vpop.f32.mrb[12].mxu0 }
 0x67d   : > { %v3342_v52 = vpop.f32.mrb[13].mxu0  ;;  %3361 = vmatmul.mubr.msk.f32.vlgmr.msra.gmra.mrb[16].mxu0 %vm1390_vm3, %v1946_v51 }
 0x67e   : > { %3376 = vmatprep.mubr.msk.f32.mxu0 %vm3975_vm2, %v3976_v12  ;;  %3445 = vmatpush3.bf16.msra.mxu0 %v3149_v17 }
 0x67f   : > { %3446 = vmatprep.subr.bf16.mxu0 %v3974_v11 }
 0x6ad   : > { %v2019_v53 = vpop.f32.mrb[6].mxu1 }
 0x6ae   : > { %v3347_v54 = vpop.f32.mrb[7].mxu1  ;;  %3366 = vmatmul.mubr.msk.f32.vlgmr.msra.gmra.mrb[10].mxu1 %vm1390_vm3, %v2019_v53 }
 0x6af   : > { %3411 = vmatprep.mubr.msk.f32.mxu1 %vm3975_vm2, %v3976_v12  ;;  %3451 = vmatpush3.bf16.msra.mxu1 %v3157_v27 }
 0x6b0   : > { %3452 = vmatprep.subr.bf16.mxu1 %v3974_v11 }
 0x6b3   : > { %3454 = vmatpush3.bf16.msra.mxu1 %v3201_v28 }
 0x6b4   : > { %3455 = vmatprep.subr.bf16.mxu1 %v3974_v11 }
 0x6b7   : > { %3457 = vmatpush3.bf16.msra.mxu1 %v3202_v29 }
 0x6b8   : > { %3458 = vmatprep.subr.bf16.mxu1 %v3974_v11 }
 0x6bb   : > { %3460 = vmatpush3.bf16.msra.mxu1 %v3203_v30 }
 0x6bc   : > { %3461 = vmatprep.subr.bf16.mxu1 %v3974_v11 }
 0x6bf   : > { %3463 = vmatpush3.bf16.msra.mxu1 %v3204_v31 }
 0x6c0   : > { %3464 = vmatprep.subr.bf16.mxu1 %v3974_v11 }
 0x6c3   : > { %3466 = vmatpush3.bf16.msra.mxu1 %v3205_v32 }
 0x6c4   : > { %3467 = vmatprep.subr.bf16.mxu1 %v3974_v11 }
 0x6c7   : > { %3469 = vmatpush3.bf16.msra.mxu1 %v3206_v33 }
 0x6c8   : > { %3470 = vmatprep.subr.bf16.mxu1 %v3974_v11  ;;  %v3100_v11 = vld [vmem:[%s1059_s29] ss:$0 sm:$0xff] }
 0x6cb   : > { %3472 = vmatpush3.bf16.msra.mxu1 %v3207_v34 }
 0x6d9   : > { %v2100_v55 = vpop.f32.mrb[14].mxu0 }
 0x6da   : > { %v3352_v56 = vpop.f32.mrb[15].mxu0  ;;  %v2323_v58 = vsel %vm1076_vm1, %v2100_v55, 0.0 }
 0x6db   : > { %v3189_v56 = vld [vmem:[%s4916_s6] sm:$0xff] (!%p3101_p13)  }
 0x74c   : > { %v2173_v57 = vpop.f32.mrb[8].mxu1 }
 0x74d   : > { %v2324_v59 = vsel %vm1076_vm1, %v2173_v57, 0.0  ;;  %v3357_v60 = vpop.f32.mrb[9].mxu1  ;;  %v3980_v57 = vmov (!%p3101_p13), 0.0|0.0  }
 0x74e   : > { %v2325_v61 = vadd.f32 %v2324_v59, %v2323_v58  ;;  %v3982_v58 = vmov (!%p3101_p13), 0.0   ;;  %v3208_v59 = vld [vmem:[%s4916_s6 + $0x8] sm:$0xff] (!%p3101_p13)  }
 0x750   : > { %v2246_v62 = vpop.f32.mrb[16].mxu0 }
 0x751   : > { %v2326_v63 = vsel %vm1076_vm1, %v2246_v62, 0.0  ;;  %v3362_v0 = vpop.f32.mrb[17].mxu0 }
 0x752   : > { %v2327_v1 = vadd.f32 %v2326_v63, %v2325_v61  ;;  %v3102_v0 = vld [vmem:[%s4917_s19] ss:$0 sm:$0xff] (!%p3101_p13) }
 0x781   : > { %v2319_v2 = vpop.f32.mrb[10].mxu1 }
 0x782   : > { %v2328_v4 = vsel %vm1076_vm1, %v2319_v2, 0.0  ;;  %v3367_v12 = vpop.f32.mrb[11].mxu1  ;;  %v2610_v2 = vstv (!%p3101_p13), %s2609_s21 }
 0x783   : > { %v2329_v5 = vadd.f32 %v2328_v4, %v2327_v1  ;;  %v3103_v4 = vld [vmem:[%s4918_s17] ss:$0 sm:$0xff] (!%p3101_p13)  ;;  %vm2611_vm6 = vcmp.eq.s32.totalorder (!%p3101_p13), %v4557_v47, %v2610_v2 }
 0x785   : > { %v2330_v7 = vadd.f32 %v2329_v5, %v4484_v3  ;;  %v3200_v3 = vld [vmem:[%s4460_s7 + $0x8] sm:$0xff]  }
 0x786   : > { %3448 = vmatpush3.bf16.msra.mxu0 %v3200_v3 }
 0x787   : > { %v4618_v8 = vadd.f32 %v3094_v6, %v2330_v7  ;;  %3473 = vmatprep.subr.bf16.mxu0 (!%p3101_p13), %v3980_v57 }
 0x789   : > { %v2339_v9 = vsel %vm1076_vm1, %v4618_v8, 0.0 }
 0x78a   : > { %2340 = vadd.xlane.f32.xlu0 %v2339_v9 }
 0x817   : > { %v2341_v10 = vpop.xlane.xlu0 %2340 }
 0x818   : > { %v2342_v13 = vmul.f32 0.03125, %v2341_v10 }
 0x81a   : > { %v2343_v14 = vsub.f32 %v4618_v8, %v2342_v13 }
 0x81c   : > { %v2344_v15 = vmul.f32 %v2343_v14, %v2343_v14 }
 0x81e   : > { %v2345_v16 = vsel %vm1076_vm1, %v2344_v15, 0.0 }
 0x81f   : > { %2346 = vadd.xlane.f32.xlu1 %v2345_v16 }
 0x8ac   : > { %v2347_v18 = vpop.xlane.xlu1 %2346 }
 0x8ad   : > { %v2348_v19 = vmul.f32 0.03125, %v2347_v18 }
 0x8af   : > { %v2349_v20 = vadd.f32 1e-05, %v2348_v19 }
 0x8b1   : > { %3634 = vrsqrt.f32 %v2349_v20 }
 0x8bb   : > { %v3635_v21 = vpop.eup %3634 }
 0x8bc   : > { %v2351_v23 = vmul.f32 %v3635_v21, %v2343_v14 }
 0x8be   : > { %v2359_v25 = vmul.f32 %v3095_v22, %v2351_v23 }
 0x8c0   : > { %v2367_v26 = vadd.f32 %v3096_v24, %v2359_v25 }
 0x8c2   : > { %3377 = vmatmul.mubr.msk.f32.vlgmr.msra.gmra.mrb[18].mxu0 %vm1076_vm1, %v2367_v26 }
 0x8c3   : > { %3422 = vmatprep.mubr.msk.f32.mxu0 (!%p3101_p13), %vm3981_vm5, %v3982_v58  ;;  %3475 = vmatpush3.bf16.msra.mxu0 (!%p3101_p13), %v3189_v56 }
 0x8c4   : > { %3476 = vmatprep.subr.bf16.mxu0 (!%p3101_p13), %v3980_v57 }
 0x8c7   : > { %3478 = vmatpush3.bf16.msra.mxu0 (!%p3101_p13), %v3208_v59 }
 0x995   : > { %v2452_v36 = vpop.f32.mrb[18].mxu0 }
 0x996   : > { %v2453_v37 = vadd.f32 %v3097_v35, %v2452_v36  ;;  %v3378_v38 = vpop.f32.mrb[19].mxu0 }
 0x998   : > { %v3099_v39 = vmul.f32 -1.702, %v2453_v37 }
 0x99a   : > { %v2458_v40 = vmul.f32 1.442695, %v3099_v39 }
 0x99c   : > { %3636 = vpow2.f32 %v2458_v40 }
 0x9a6   : > { %v3637_v41 = vpop.eup %3636 }
 0x9a7   : > { %v2460_v42 = vadd.f32 1.0, %v3637_v41 }
 0x9a9   : > { %3638 = vrcp.f32 %v2460_v42 }
 0x9b3   : > { %v3639_v43 = vpop.eup %3638 }
 0x9b4   : > { %v2463_v44 = vmul.f32 %v3639_v43, %v2453_v37 }
 0x9b6   : > { %3412 = vmatmul.mubr.f32.vlgmr.msra.gmra.mrb[12].mxu1 %v2463_v44 }
 0xa88   : > { %2578 = sbr.rel (%p3101_p13) target bundleno = 3242 (0xcaa), region = 132 }
 0xa89   : > { %v2569_v45 = vpop.f32.mrb[12].mxu1 }
 0xa8a   : > { %v2570_v46 = vadd.f32 %v3100_v11, %v2569_v45  ;;  %v3413_v48 = vpop.f32.mrb[13].mxu1 }
 0xa8c   : > { %v2573_v49 = vadd.f32 %v2570_v46, %v4618_v8 }
 0xa8e   : > { %2574 = vst.msk [vmem:[#allocation2] sm:$0xff] %vm1076_vm1, %v2573_v49  ;;  %v2579_v50 = vsel (!%p3101_p13), %vm1076_vm1, %v2573_v49, 0.0 }
 0xa8f   : > { %2580 = vadd.xlane.f32.xlu0 %v2579_v50 }
 0xb1c   : > { %v2581_v51 = vpop.xlane.xlu0 %2580 }
 0xb1d   : > { %v2582_v52 = vmul.f32 0.03125, %v2581_v51 }
 0xb1f   : > { %v2583_v53 = vsub.f32 %v2573_v49, %v2582_v52 }
 0xb21   : > { %v2584_v54 = vmul.f32 %v2583_v53, %v2583_v53 }
 0xb23   : > { %v2585_v55 = vsel %vm1076_vm1, %v2584_v54, 0.0 }
 0xb24   : > { %2586 = vadd.xlane.f32.xlu0 %v2585_v55 }
 0xbb1   : > { %v2587_v60 = vpop.xlane.xlu0 %2586 }
 0xbb2   : > { %v2588_v61 = vmul.f32 0.03125, %v2587_v60 }
 0xbb4   : > { %v2589_v62 = vadd.f32 1e-05, %v2588_v61 }
 0xbb6   : > { %3640 = vrsqrt.f32 %v2589_v62 }
 0xbc0   : > { %v3641_v63 = vpop.eup %3640 }
 0xbc1   : > { %v2591_v1 = vmul.f32 %v3641_v63, %v2583_v53 }
 0xbc3   : > { %v2599_v12 = vmul.f32 %v3102_v0, %v2591_v1 }
 0xbc5   : > { %v2607_v5 = vadd.f32 %v3103_v4, %v2599_v12 }
 0xbc7   : > { %2608 = vst.msk [vmem:[%s4477_s25] sm:$0xff] %vm1076_vm1, %v2607_v5  ;;  %v2614_v6 = vsel %vm2611_vm6, %v2607_v5, 0.0 }
 0xbc8   : > { %v2615_v7 = vsel %vm1076_vm1, %v2614_v6, 0.0 }
 0xbc9   : > { %v2616_v8 = vrot.slane %v2615_v7, 4 }
 0xbcb   : > { %v2617_v9 = vadd.f32 %v2616_v8, %v2615_v7 }
 0xbcd   : > { %v2618_v10 = vrot.slane %v2617_v9, 2 }
 0xbcf   : > { %v2619_v13 = vadd.f32 %v2618_v10, %v2617_v9 }
 0xbd1   : > { %v2620_v14 = vrot.slane %v2619_v13, 1 }
 0xbd3   : > { %v2621_v15 = vadd.f32 %v2620_v14, %v2619_v13 }
 0xbd5   : > { %3423 = vmatmul.mubr.msk.f32.vlgmr.msra.gmra.mrb[0].mxu0 %vm1076_vm1, %v2621_v15 }
 0xca8   : > { %v2699_v16 = vpop.f32.mrb[0].mxu0 }
 0xca9   : > { %2704 = vst.msk [vmem:[%s1010_s24] sm:$0x1] %vm2703_vm7, %v2699_v16  ;;  %v3424_v17 = vpop.f32.mrb[1].mxu0 }
 0xcaa PF: > { %s4919_s9 = sld [smem:[#allocation28_spill]]  ;;  %s4920_s22 = sld [smem:[#allocation36_spill]] }
 0xcab   : > { %s4921_s23 = sld [smem:[#allocation60_spill]]  ;;  %s2723_s27 = sshll.u32 %s4477_s25, 4  ;;  %s2724_s27 = int_to_ptr.vmem [resolvable:$true] %s2723_s27 }
 0xcac   : > { %s2706_s7 = scalar_lea.sflag [#allocation7], %s4412_s1  ;;  %s3802_s3 = scalar_lea.vmem %s2724_s27, 128 }
 0xcad   : > { %p3803_p9 = scmp.ne.s32.totalorder %s2724_s27, %s3802_s3  ;;  %s3983_s11 = smov [#allocation14]  }
 0xcae   : > { %s3806_s8 = sshll.u32 %s3983_s11, 4  ;;  %s3807_s8 = int_to_ptr.vmem [resolvable:$false] %s3806_s8 }
 0xcaf   : > { %s3808_s12 = scalar_lea.vmem %s3807_s8, 256  ;;  %p3809_p12 = scmp.lt.s32.totalorder %s2724_s27, %s3807_s8 }
 0xcb0   : > { %s3106_s28 = sshll.u32 %s4919_s9, 7  ;;  %p4922_p4 = scmp.ne.s32.totalorder %s4920_s22, 0 }
 0xcb1   : > { %s4692_s10 = scalar_lea.hbm %s4921_s23, %s3106_s28  ;;  %p3810_p0 = scmp.lt.s32.totalorder %s3808_s12, %s3802_s3 }
 0xcb2   : > { %p3804_p5 = pnand %p3803_p9, %p4922_p4 }
 0xcb3   : > { %p3811_p1 = por %p3810_p0, %p3809_p12 }
 0xcb4   : > { %p3805_p2 = pneg %p3804_p5 }
 0xcb6   : > { %p3812_p11 = pnand %p3811_p1, %p3805_p2 }
 0xcb8   : > { %3815 = shalt.err (!%p3812_p11)
}
 0xcb9   : > { %s3816_s25 = scalar_lea.hbm %s4692_s10, 128  ;;  %s3820_s18 = scalar_lea.hbm %s4921_s23, 256 }
 0xcba   : > { %p3817_p6 = scmp.ne.s32.totalorder %s4692_s10, %s3816_s25  ;;  %p3821_p3 = scmp.lt.u32.totalorder %s4692_s10, %s4921_s23 }
 0xcbb   : > { %p3822_p7 = scmp.lt.u32.totalorder %s3820_s18, %s3816_s25  ;;  %p3824_p9 = scmp.lt.u32.totalorder %s3816_s25, %s4692_s10 }
 0xcbc   : > { %p3818_p10 = pnand %p3817_p6, %p4922_p4 }
 0xcbd   : > { %p3823_p13 = por %p3822_p7, %p3821_p3 }
 0xcbe   : > { %p3819_p8 = pneg %p3818_p10 }
 0xcbf   : > { %p3825_p5 = por %p3824_p9, %p3823_p13 }
 0xcc1   : > { %p3826_p2 = pnand %p3825_p5, %p3819_p8 }
 0xcc3   : > { %3829 = shalt.err (!%p3826_p2)
}
 0xcc4   : > { %3489 = dma.vmem_to_hbm [thread:$0]  (%p4922_p4), %s2724_s27, 128, %s4692_s10, %s2706_s7  }
 0xcc5   : > { %s3107_s5 = sshll.u32 %s4919_s9, 4  ;;  %s2736_s21 = sshll.u32 %s1010_s24, 4  ;;  %s2737_s21 = int_to_ptr.vmem [resolvable:$true] %s2736_s21 }
 0xcc6   : > { %s4923_s19 = sld [smem:[#allocation61_spill]]  ;;  %s2711_s0 = scalar_lea.sflag [#allocation16], %s4412_s1 }
 0xcc7   : > { %s3830_s17 = scalar_lea.vmem %s2737_s21, 16  ;;  %s3984_s28 = smov [#allocation15]  }
 0xcc8   : > { %p3831_p12 = scmp.ne.s32.totalorder %s2737_s21, %s3830_s17  ;;  %s3834_s15 = sshll.u32 %s3984_s28, 4  ;;  %s3835_s15 = int_to_ptr.vmem [resolvable:$false] %s3834_s15 }
 0xcc9   : > { %s3836_s14 = scalar_lea.vmem %s3835_s15, 32  ;;  %p3837_p11 = scmp.lt.s32.totalorder %s2737_s21, %s3835_s15 }
 0xcca   : > { %p3832_p0 = pnand %p3831_p12, %p4922_p4  ;;  %p3838_p6 = scmp.lt.s32.totalorder %s3836_s14, %s3830_s17 }
 0xccc   : > { %s4719_s20 = scalar_lea.hbm %s4923_s19, %s3107_s5  ;;  %p3833_p1 = pneg %p3832_p0 }
 0xccd   : > { %p3839_p10 = por %p3838_p6, %p3837_p11 }
 0xccf   : > { %p3840_p8 = pnand %p3839_p10, %p3833_p1 }
 0xcd1   : > { %3843 = shalt.err (!%p3840_p8)
}
 0xcd2   : > { %s3844_s1 = scalar_lea.hbm %s4719_s20, 16  ;;  %s3848_s10 = scalar_lea.hbm %s4923_s19, 32 }
 0xcd3   : > { %p3845_p3 = scmp.ne.s32.totalorder %s4719_s20, %s3844_s1  ;;  %p3849_p9 = scmp.lt.u32.totalorder %s4719_s20, %s4923_s19 }
 0xcd4   : > { %p3850_p5 = scmp.lt.u32.totalorder %s3848_s10, %s3844_s1  ;;  %p3852_p12 = scmp.lt.u32.totalorder %s3844_s1, %s4719_s20 }
 0xcd5   : > { %p3846_p7 = pnand %p3845_p3, %p4922_p4 }
 0xcd6   : > { %p3851_p2 = por %p3850_p5, %p3849_p9 }
 0xcd7   : > { %p3847_p13 = pneg %p3846_p7 }
 0xcd8   : > { %p3853_p0 = por %p3852_p12, %p3851_p2 }
 0xcda   : > { %p3854_p1 = pnand %p3853_p0, %p3847_p13 }
 0xcdc   : > { %3857 = shalt.err (!%p3854_p1)
}
 0xcdd   : > { %3490 = dma.vmem_to_hbm [thread:$0]  (%p4922_p4), %s2737_s21, 16, %s4719_s20, %s2711_s0  }
 0xcde PF: > { %s4924_s3 = sld [smem:[#allocation31_spill]]  ;;  %s4925_s11 = sld [smem:[#allocation23_spill]] }
 0xcdf   : > { %s4926_s8 = sld [smem:[#allocation37_spill]] }
 0xce4   : > { %p3517_p11 = scmp.ge.s32.totalorder %s4924_s3, 2  ;;  %s2748_s12 = sand.u32 1, %s4925_s11  }
 0xce5   : > { %p4927_p6 = scmp.ne.s32.totalorder %s4926_s8, 0  ;;  %s2749_s25 = scalar_lea.sflag [#allocation7], %s2748_s12 }
 0xce7   : > { %p3510_p10 = pnand %p3517_p11, %p4927_p6 }
 0xce9   : > { %3917 = dma.done.wait (!%p3510_p10), %s2749_s25, 128  }
 0xcea   : > { %3919 = vsyncadd (!%p3510_p10), %s2749_s25, 4294967168  ;;  %s2758_s26 = scalar_lea.sflag [#allocation16], %s2748_s12 }
 0xceb   : > { %3921 = dma.done.wait (!%p3510_p10), %s2758_s26, 16  }
 0xcec   : > { %3923 = vsyncadd (!%p3510_p10), %s2758_s26, 4294967280  ;;  %s53_s5 = sadd.s32 1, %s4924_s3   ;;  %s4928_s17 = sld [smem:[#allocation24_spill]] }
 0xced   : > { %p50_p8 = scmp.ge.s32.totalorder %s53_s5, 6   ;;  %s4929_s7 = sld [smem:[#allocation25_spill]] }
 0xcee   : > { %s4930_s28 = sld [smem:[#allocation35_spill]]  ;;  %s4931_s29 = sld [smem:[#allocation26_spill]] }
 0xcef   : > { %s4932_s3 = sld [smem:[#allocation27_spill]]  ;;  %s4933_s0 = sld [smem:[#allocation34_spill]] }
 0xcf0   : > { %s4934_s4 = sld [smem:[#allocation29_spill]]  ;;  %s4935_s30 = sld [smem:[#allocation30_spill]] }
 0xcf1   : > { %s4936_s24 = sld [smem:[#allocation32_spill]]  ;;  %s4937_s25 = sld [smem:[#allocation33_spill]] }
 0xcf2   :  { %52 = sbr.rel (!%p50_p8) target bundleno = 45 (0x2d), region = 258 }
 0xcf9   :  { %2762 = vsyncpa [#allocation6], 1 }
 0xcfa   :  { %2764 = vsyncpa [#allocation6 + $0x1], 1 }
 0xcfb   :  { %2765 = vsyncpa [#allocation9], 1 }
 0xcfc   :  { %2767 = vsyncpa [#allocation9 + $0x1], 1 }
 0xcfd   :  { %2768 = vsyncpa [#allocation12], 1 }
 0xcfe   :  { %2770 = vsyncpa [#allocation12 + $0x1], 1 }
 0xcff   :  { %2771 = vsyncpa [#allocation7], 1 }
 0xd00   :  { %2773 = vsyncpa [#allocation7 + $0x1], 1 }
 0xd01   :  { %2774 = vsyncpa [#allocation16], 1 }
 0xd02   :  { %2776 = vsyncpa [#allocation16 + $0x1], 1 }

</bundles_post_ra>
